<compile_context>
chip_gen: v7x
topology: tpu7x:2x2x1
jax: 0.10.0
libtpu: 0.0.40
codegen_flags: <defaults>
</compile_context>

<pallas_src>
import functools
import math

import jax
import jax.numpy as jnp
from jax.experimental import pallas as pl
from jax.experimental.pallas import tpu as pltpu


# ---------------------------------------------------------------------------
# Pallas kernel: full N-layer TransformerEncoder (post-norm, ReLU FFN, eval mode)
# fused into a single pallas_call; weights arrive as one packed VMEM blob.
# ---------------------------------------------------------------------------
def _fused_transformer_kernel(x_ref, w_ref, o_ref, *, num_heads, num_layers,
                              ff_dim, layer_rows, row_off, eps=1e-5):
    Bb, S, E = x_ref.shape              # batch-per-block, seq, d_model (static)
    H = num_heads
    Dh = E // H
    F = ff_dim
    mm_dtype = w_ref.dtype              # matmul input dtype (f32 default, bf16 opt.)

    # Keep the activation flattened as (Bb*S, E): every projection / FFN matmul
    # feeds all rows to the MXU in one pass.  Elementwise math stays f32.
    xs = x_ref[...].reshape(Bb * S, E).astype(jnp.float32)

    def split_heads(t):                 # (Bb*S, E) -> (H*Bb, S, Dh)
        # Lane split + one (1,0,2) 3-D transpose + contiguous major-dim reshapes;
        # the merged (head, batch) axis becomes the einsum batch dim.
        return (t.reshape(Bb * S, H, Dh)
                 .transpose(1, 0, 2)            # (H, Bb*S, Dh)
                 .reshape(H * Bb, S, Dh))

    def merge_heads(t):                 # (H*Bb, S, Dh) -> (Bb*S, E)
        return (t.reshape(H, Bb * S, Dh)
                 .transpose(1, 0, 2)            # (Bb*S, H, Dh)
                 .reshape(Bb * S, E))

    for layer in range(num_layers):
        base = layer * layer_rows

        def wmat(name, rows, cols):     # weight matrix, kept in blob dtype
            r0 = base + row_off[name]
            return w_ref[r0:r0 + rows, :cols]

        def brow(i, cols):              # bias / LayerNorm row -> f32 (1, cols)
            r0 = base + row_off["bias"] + i
            return w_ref[r0:r0 + 1, :cols].astype(jnp.float32)

        w_qkv = wmat("w_qkv", E, 3 * E)
        w_out = wmat("w_out", E, E)
        w_ff1 = wmat("w_ff1", E, F)
        w_ff2 = wmat("w_ff2", F, E)
        b_qkv = brow(0, 3 * E)
        b_out = brow(1, E)
        ln1_w = brow(2, E)
        ln1_b = brow(3, E)
        ln2_w = brow(4, E)
        ln2_b = brow(5, E)
        b_ff1 = brow(6, F)
        b_ff2 = brow(7, E)

        # --- multi-head self-attention (1/sqrt(Dh) pre-folded into the Q part) ---
        qkv = jnp.dot(xs.astype(mm_dtype), w_qkv,
                      preferred_element_type=jnp.float32) + b_qkv      # (Bb*S, 3E)

        q = split_heads(qkv[:, :E])
        k = split_heads(qkv[:, E:2 * E])
        v = split_heads(qkv[:, 2 * E:])

        s = jnp.einsum("gqd,gkd->gqk", q.astype(mm_dtype), k.astype(mm_dtype),
                       preferred_element_type=jnp.float32)             # (H*Bb, S, S)
        s = s - jnp.max(s, axis=-1, keepdims=True)
        p = jnp.exp(s)
        p = p / jnp.sum(p, axis=-1, keepdims=True)          # exact softmax normalizer
        ctx = jnp.einsum("gqk,gkd->gqd", p.astype(mm_dtype), v.astype(mm_dtype),
                         preferred_element_type=jnp.float32)            # (H*Bb, S, Dh)

        attn = jnp.dot(merge_heads(ctx).astype(mm_dtype), w_out,
                       preferred_element_type=jnp.float32) + b_out

        # --- residual + LayerNorm1 (post-norm) -----------------------------------
        # TODO(synk): dropout layers in nn.TransformerEncoderLayer are treated as
        # eval-mode identities (no train-mode dropout in this kernel).
        y = xs + attn
        mu = jnp.mean(y, axis=-1, keepdims=True)
        var = jnp.mean((y - mu) ** 2, axis=-1, keepdims=True)
        y = (y - mu) * jax.lax.rsqrt(var + eps) * ln1_w + ln1_b

        # --- feed-forward (ReLU) + residual + LayerNorm2 --------------------------
        h1 = jnp.dot(y.astype(mm_dtype), w_ff1,
                     preferred_element_type=jnp.float32) + b_ff1
        h1 = jnp.maximum(h1, 0.0)
        z = jnp.dot(h1.astype(mm_dtype), w_ff2,
                    preferred_element_type=jnp.float32) + b_ff2
        y2 = y + z
        mu2 = jnp.mean(y2, axis=-1, keepdims=True)
        var2 = jnp.mean((y2 - mu2) ** 2, axis=-1, keepdims=True)
        xs = (y2 - mu2) * jax.lax.rsqrt(var2 + eps) * ln2_w + ln2_b

    o_ref[...] = xs.reshape(Bb, S, E).astype(o_ref.dtype)


# ---------------------------------------------------------------------------
# Host-side parameter packing: all weights/biases of all layers -> ONE blob.
# ---------------------------------------------------------------------------
def _pack_params(layers_params, num_heads, dtype=jnp.float32):
    """Pack per-layer params into one (rows, C) blob (single weight DMA).

    Per-layer row layout (offsets are multiples of 8 for aligned sublane loads):
      w_qkv (E,3E) | w_out (E,E) | w_ff1 (E,F) | w_ff2 (F,E)   (pre-transposed: y = x@W)
      bias block (8 rows): b_qkv, b_out, ln1_w, ln1_b, ln2_w, ln2_b, b_ff1, b_ff2
    The 1/sqrt(Dh) attention scale is folded into the Q part of w_qkv/b_qkv.
    """
    E = int(layers_params[0]["out_w"].shape[0])
    F = int(layers_params[0]["ff1_w"].shape[0])
    Dh = E // num_heads
    scale = 1.0 / math.sqrt(Dh)
    C = max(3 * E, F)

    def pad8(n):
        return ((n + 7) // 8) * 8

    row_off, r = {}, 0
    for name, rows in (("w_qkv", E), ("w_out", E), ("w_ff1", E),
                       ("w_ff2", F), ("bias", 8)):
        row_off[name] = r
        r += pad8(rows)
    layer_rows = r

    blob = jnp.zeros((layer_rows * len(layers_params), C), jnp.float32)

    for li, p in enumerate(layers_params):
        base = li * layer_rows
        f32 = lambda a: jnp.asarray(a, jnp.float32)

        in_w = f32(p["in_w"])                           # (3E, E) PyTorch layout
        in_b = f32(p["in_b"]).reshape(1, 3 * E)
        in_w = in_w.at[:E, :].multiply(scale)           # fold q-scale
        in_b = in_b.at[:, :E].multiply(scale)

        def put(name, mat):
            nonlocal blob
            rows, cols = mat.shape
            r0 = base + row_off[name]
            blob = blob.at[r0:r0 + rows, :cols].set(mat)

        put("w_qkv", in_w.T)                            # (E, 3E)
        put("w_out", f32(p["out_w"]).T)                 # (E, E)
        put("w_ff1", f32(p["ff1_w"]).T)                 # (E, F)
        put("w_ff2", f32(p["ff2_w"]).T)                 # (F, E)

        bias = jnp.zeros((8, C), jnp.float32)
        bias = bias.at[0, :3 * E].set(in_b.reshape(-1))
        bias = bias.at[1, :E].set(f32(p["out_b"]).reshape(-1))
        bias = bias.at[2, :E].set(f32(p["ln1_w"]).reshape(-1))
        bias = bias.at[3, :E].set(f32(p["ln1_b"]).reshape(-1))
        bias = bias.at[4, :E].set(f32(p["ln2_w"]).reshape(-1))
        bias = bias.at[5, :E].set(f32(p["ln2_b"]).reshape(-1))
        bias = bias.at[6, :F].set(f32(p["ff1_b"]).reshape(-1))
        bias = bias.at[7, :E].set(f32(p["ff2_b"]).reshape(-1))
        put("bias", bias)

    return blob.astype(dtype), row_off, layer_rows


def _num_tensorcores_per_device():
    """Best-effort count of TensorCores addressable by one Pallas grid (perf-only)."""
    try:
        info = pltpu.get_tpu_info()
        for attr in ("num_cores", "core_count", "num_tensorcores", "tensor_core_count"):
            n = getattr(info, attr, None)
            if isinstance(n, int) and 0 < n <= 8:
                return n
    except Exception:
        pass
    try:
        kind = jax.devices()[0].device_kind.lower()
        if "v7" in kind or "v5p" in kind:
            return 2
        if "v4" in kind and "lite" not in kind and "v4i" not in kind:
            return 2
    except Exception:
        pass
    return 1


# ---------------------------------------------------------------------------
# Wrapper
# ---------------------------------------------------------------------------
def temporal_transformer(x, layers_params, num_heads, *,
                         matmul_dtype=jnp.float32, num_tensorcores=None):
    """Forward pass of TemporalTransformer; x: (B, S, E) -> (B, S, E)."""
    B, S, E = x.shape
    num_layers = len(layers_params)
    ff_dim = int(layers_params[0]["ff1_w"].shape[0])

    # All 2x12 parameter tensors -> ONE packed blob => a single weight DMA per call.
    blob, row_off, layer_rows = _pack_params(layers_params, num_heads, matmul_dtype)

    # Grid: single step with the whole batch folded into the matmul rows on
    # single-TC chips (v5e/v6e); one batch-folded step per TensorCore on
    # multi-TC chips (v7x / v4 / v5p megacore).
    n_tc = num_tensorcores if num_tensorcores is not None else _num_tensorcores_per_device()
    if n_tc > 1 and B > 1:
        num_blocks = n_tc if B % n_tc == 0 else B   # keep blocks exact if B % cores != 0
        bb = B // num_blocks
    else:
        num_blocks, bb = 1, B

    x = jnp.asarray(x, jnp.float32)

    kernel = functools.partial(
        _fused_transformer_kernel,
        num_heads=num_heads, num_layers=num_layers, ff_dim=ff_dim,
        layer_rows=layer_rows, row_off=row_off)

    # Total resident VMEM (weights + activations + scores) is << scoped VMEM even
    # on v7x (64 MiB); no tiling needed at these shapes.
    return pl.pallas_call(
        kernel,
        out_shape=jax.ShapeDtypeStruct((B, S, E), jnp.float32),
        grid=(num_blocks,),
        in_specs=[pl.BlockSpec((bb, S, E), lambda i: (i, 0, 0)),
                  pl.BlockSpec(blob.shape, lambda i: (0, 0))],      # weights resident
        out_specs=pl.BlockSpec((bb, S, E), lambda i: (i, 0, 0)),
        compiler_params=pltpu.CompilerParams(
            dimension_semantics=("parallel",) if num_blocks > 1 else ("arbitrary",)),
    )(x, blob)


# ---------------------------------------------------------------------------
# Pure-JAX reference (mirrors nn.TransformerEncoderLayer in eval mode)
# ---------------------------------------------------------------------------
def _ref_layer(x, p, num_heads, eps=1e-5):
    B, S, E = x.shape
    Dh = E // num_heads
    qkv = x @ p["in_w"].T + p["in_b"][0]
    q, k, v = qkv[..., :E], qkv[..., E:2 * E], qkv[..., 2 * E:]

    def split(t):  # (B, S, E) -> (B, H, S, Dh)
        return t.reshape(B, S, num_heads, Dh).transpose(0, 2, 1, 3)

    q, k, v = split(q) / math.sqrt(Dh), split(k), split(v)
    s = jnp.einsum("bhqd,bhkd->bhqk", q, k)
    a = jax.nn.softmax(s, axis=-1)
    o = jnp.einsum("bhqk,bhkd->bhqd", a, v).transpose(0, 2, 1, 3).reshape(B, S, E)
    attn = o @ p["out_w"].T + p["out_b"][0]

    def ln(t, w, b):
        mu = t.mean(-1, keepdims=True)
        var = ((t - mu) ** 2).mean(-1, keepdims=True)
        return (t - mu) * jax.lax.rsqrt(var + eps) * w[0] + b[0]

    y = ln(x + attn, p["ln1_w"], p["ln1_b"])
    z = jnp.maximum(y @ p["ff1_w"].T + p["ff1_b"][0], 0.0) @ p["ff2_w"].T + p["ff2_b"][0]
    return ln(y + z, p["ln2_w"], p["ln2_b"])


def _ref(x, layers_params, num_heads):
    for p in layers_params:
        x = _ref_layer(x, p, num_heads)
    return x


# ---------------------------------------------------------------------------
# Deterministic parameter init (synthetic; matches nn.TransformerEncoderLayer shapes)
# ---------------------------------------------------------------------------
def init_layer_params(key, d_model, ff_dim):
    ks = jax.random.split(key, 4)
    scale = 0.05
    return {
        "in_w":  scale * jax.random.normal(ks[0], (3 * d_model, d_model), jnp.float32),
        "in_b":  jnp.zeros((1, 3 * d_model), jnp.float32),
        "out_w": scale * jax.random.normal(ks[1], (d_model, d_model), jnp.float32),
        "out_b": jnp.zeros((1, d_model), jnp.float32),
        "ln1_w": jnp.ones((1, d_model), jnp.float32),
        "ln1_b": jnp.zeros((1, d_model), jnp.float32),
        "ln2_w": jnp.ones((1, d_model), jnp.float32),
        "ln2_b": jnp.zeros((1, d_model), jnp.float32),
        "ff1_w": scale * jax.random.normal(ks[2], (ff_dim, d_model), jnp.float32),
        "ff1_b": jnp.zeros((1, ff_dim), jnp.float32),
        "ff2_w": scale * jax.random.normal(ks[3], (d_model, ff_dim), jnp.float32),
        "ff2_b": jnp.zeros((1, d_model), jnp.float32),
    }


if __name__ == "__main__":
    # Small shapes consistent with TemporalTransformer(input_dim=32, num_heads=4,
    # ff_dim=64, num_layers=2); x is (batch, seq, input_dim).
    B, S, E = 2, 8, 32
    NUM_HEADS = 4
    FF_DIM = 64
    NUM_LAYERS = 2

    root = jax.random.PRNGKey(0)
    kx, kp = jax.random.split(root)
    x = jax.random.normal(kx, (B, S, E), jnp.float32)
    layer_keys = jax.random.split(kp, NUM_LAYERS)
    layers_params = [init_layer_params(k, E, FF_DIM) for k in layer_keys]

    out = temporal_transformer(x, layers_params, NUM_HEADS)
    out = jax.block_until_ready(out)

    # Full-precision reference (kernel matmuls are true f32); exact softmax in the
    # kernel lets the tolerance go back to 1e-4.
    with jax.default_matmul_precision("float32"):
        ref = _ref(x, layers_params, NUM_HEADS)

    assert out.shape == (B, S, E)
    assert jnp.allclose(out, ref, rtol=1e-4, atol=1e-4), "mismatch vs. pure-JAX reference"

    print("KERNEL_OK")
</pallas_src>

<mosaic_0001>
module attributes {stable_mosaic.version = 11 : i64} {
  func.func @_fused_transformer_kernel(%arg0: i32, %arg1: memref<2x8x32xf32, #tpu.memory_space<vmem>>, %arg2: memref<336x96xf32, #tpu.memory_space<vmem>>, %arg3: memref<2x8x32xf32, #tpu.memory_space<vmem>>) attributes {dimension_semantics = [#tpu.dimension_semantics<arbitrary>], iteration_bounds = array<i64: 1>, scalar_prefetch = 0 : i64, scratch_operands = 0 : i64, tpu.core_type = #tpu.core_type<tc>, window_params = [{transform_indices = @transform_0, window_bounds = array<i64: 2, 8, 32>}, {pipeline_mode = #tpu.pipeline_mode<synchronous>, transform_indices = @transform_1, window_bounds = array<i64: 336, 96>}, {transform_indices = @transform_2, window_bounds = array<i64: 2, 8, 32>}]} {
    %c0 = arith.constant 0 : index
    %c0_0 = arith.constant 0 : index
    %c0_1 = arith.constant 0 : index
    %0 = vector.load %arg1[%c0, %c0_0, %c0_1] : memref<2x8x32xf32, #tpu.memory_space<vmem>>, vector<2x8x32xf32>
    %1 = vector.shape_cast %0 : vector<2x8x32xf32> to vector<16x32xf32>
    %c0_2 = arith.constant 0 : index
    %c0_3 = arith.constant 0 : index
    %2 = vector.load %arg2[%c0_2, %c0_3] : memref<336x96xf32, #tpu.memory_space<vmem>>, vector<32x96xf32>
    %c32 = arith.constant 32 : index
    %c0_4 = arith.constant 0 : index
    %3 = vector.load %arg2[%c32, %c0_4] : memref<336x96xf32, #tpu.memory_space<vmem>>, vector<32x32xf32>
    %c64 = arith.constant 64 : index
    %c0_5 = arith.constant 0 : index
    %4 = vector.load %arg2[%c64, %c0_5] : memref<336x96xf32, #tpu.memory_space<vmem>>, vector<32x64xf32>
    %c96 = arith.constant 96 : index
    %c0_6 = arith.constant 0 : index
    %5 = vector.load %arg2[%c96, %c0_6] : memref<336x96xf32, #tpu.memory_space<vmem>>, vector<64x32xf32>
    %c160 = arith.constant 160 : index
    %c0_7 = arith.constant 0 : index
    %6 = vector.load %arg2[%c160, %c0_7] : memref<336x96xf32, #tpu.memory_space<vmem>>, vector<1x96xf32>
    %c161 = arith.constant 161 : index
    %c0_8 = arith.constant 0 : index
    %7 = vector.load %arg2[%c161, %c0_8] : memref<336x96xf32, #tpu.memory_space<vmem>>, vector<1x32xf32>
    %c162 = arith.constant 162 : index
    %c0_9 = arith.constant 0 : index
    %8 = vector.load %arg2[%c162, %c0_9] : memref<336x96xf32, #tpu.memory_space<vmem>>, vector<1x32xf32>
    %c163 = arith.constant 163 : index
    %c0_10 = arith.constant 0 : index
    %9 = vector.load %arg2[%c163, %c0_10] : memref<336x96xf32, #tpu.memory_space<vmem>>, vector<1x32xf32>
    %c164 = arith.constant 164 : index
    %c0_11 = arith.constant 0 : index
    %10 = vector.load %arg2[%c164, %c0_11] : memref<336x96xf32, #tpu.memory_space<vmem>>, vector<1x32xf32>
    %c165 = arith.constant 165 : index
    %c0_12 = arith.constant 0 : index
    %11 = vector.load %arg2[%c165, %c0_12] : memref<336x96xf32, #tpu.memory_space<vmem>>, vector<1x32xf32>
    %c166 = arith.constant 166 : index
    %c0_13 = arith.constant 0 : index
    %12 = vector.load %arg2[%c166, %c0_13] : memref<336x96xf32, #tpu.memory_space<vmem>>, vector<1x64xf32>
    %c167 = arith.constant 167 : index
    %c0_14 = arith.constant 0 : index
    %13 = vector.load %arg2[%c167, %c0_14] : memref<336x96xf32, #tpu.memory_space<vmem>>, vector<1x32xf32>
    %cst = arith.constant dense<0.000000e+00> : vector<16x96xf32>
    %14 = tpu.matmul %1, %2, %cst {dimension_numbers = #tpu.dot_dimension_numbers<[1], [0], [0], [1], [0, 0, 1, 1], [], []>} : vector<16x32xf32>, vector<32x96xf32>, vector<16x96xf32> -> vector<16x96xf32>
    %15 = vector.broadcast %6 : vector<1x96xf32> to vector<16x96xf32>
    %16 = arith.addf %14, %15 : vector<16x96xf32>
    %17 = vector.extract_strided_slice %16 {offsets = [0, 0], sizes = [16, 32], strides = [1, 1]} : vector<16x96xf32> to vector<16x32xf32>
    %18 = vector.shape_cast %17 : vector<16x32xf32> to vector<16x4x8xf32>
    %19 = tpu.transpose %18, [1, 0, 2] : vector<16x4x8xf32> -> vector<4x16x8xf32>
    %20 = vector.shape_cast %19 : vector<4x16x8xf32> to vector<8x8x8xf32>
    %21 = vector.extract_strided_slice %16 {offsets = [0, 32], sizes = [16, 32], strides = [1, 1]} : vector<16x96xf32> to vector<16x32xf32>
    %22 = vector.shape_cast %21 : vector<16x32xf32> to vector<16x4x8xf32>
    %23 = tpu.transpose %22, [1, 0, 2] : vector<16x4x8xf32> -> vector<4x16x8xf32>
    %24 = vector.shape_cast %23 : vector<4x16x8xf32> to vector<8x8x8xf32>
    %25 = vector.extract_strided_slice %16 {offsets = [0, 64], sizes = [16, 32], strides = [1, 1]} : vector<16x96xf32> to vector<16x32xf32>
    %26 = vector.shape_cast %25 : vector<16x32xf32> to vector<16x4x8xf32>
    %27 = tpu.transpose %26, [1, 0, 2] : vector<16x4x8xf32> -> vector<4x16x8xf32>
    %28 = vector.shape_cast %27 : vector<4x16x8xf32> to vector<8x8x8xf32>
    "tpu.trace_start"() <{level = 10 : i32, message = "gqd,gkd->gqk"}> : () -> ()
    %cst_15 = arith.constant dense<0.000000e+00> : vector<8x8x8xf32>
    %29 = tpu.matmul %20, %24, %cst_15 {dimension_numbers = #tpu.dot_dimension_numbers<[2], [2], [1], [1], [0, 0, 0, 1, 1, 1], [0], [0]>} : vector<8x8x8xf32>, vector<8x8x8xf32>, vector<8x8x8xf32> -> vector<8x8x8xf32>
    "tpu.trace_stop"() : () -> ()
    %cst_16 = arith.constant dense<0xFF800000> : vector<8x8xf32>
    %30 = vector.multi_reduction <maximumf>, %29, %cst_16 [2] : vector<8x8x8xf32> to vector<8x8xf32>
    %31 = vector.shape_cast %30 : vector<8x8xf32> to vector<8x8x1xf32>
    %32 = vector.broadcast %31 : vector<8x8x1xf32> to vector<8x8x8xf32>
    %33 = arith.subf %29, %32 : vector<8x8x8xf32>
    %34 = math.exp %33 : vector<8x8x8xf32>
    %cst_17 = arith.constant dense<0.000000e+00> : vector<8x8xf32>
    %35 = vector.multi_reduction <add>, %34, %cst_17 [2] : vector<8x8x8xf32> to vector<8x8xf32>
    %36 = vector.shape_cast %35 : vector<8x8xf32> to vector<8x8x1xf32>
    %37 = vector.broadcast %36 : vector<8x8x1xf32> to vector<8x8x8xf32>
    %38 = arith.divf %34, %37 : vector<8x8x8xf32>
    "tpu.trace_start"() <{level = 10 : i32, message = "gqk,gkd->gqd"}> : () -> ()
    %cst_18 = arith.constant dense<0.000000e+00> : vector<8x8x8xf32>
    %39 = tpu.matmul %38, %28, %cst_18 {dimension_numbers = #tpu.dot_dimension_numbers<[2], [1], [1], [2], [0, 0, 0, 1, 1, 2], [0], [0]>} : vector<8x8x8xf32>, vector<8x8x8xf32>, vector<8x8x8xf32> -> vector<8x8x8xf32>
    "tpu.trace_stop"() : () -> ()
    %40 = vector.shape_cast %39 : vector<8x8x8xf32> to vector<4x16x8xf32>
    %41 = tpu.transpose %40, [1, 0, 2] : vector<4x16x8xf32> -> vector<16x4x8xf32>
    %42 = vector.shape_cast %41 : vector<16x4x8xf32> to vector<16x32xf32>
    %cst_19 = arith.constant dense<0.000000e+00> : vector<16x32xf32>
    %43 = tpu.matmul %42, %3, %cst_19 {dimension_numbers = #tpu.dot_dimension_numbers<[1], [0], [0], [1], [0, 0, 1, 1], [], []>} : vector<16x32xf32>, vector<32x32xf32>, vector<16x32xf32> -> vector<16x32xf32>
    %44 = vector.broadcast %7 : vector<1x32xf32> to vector<16x32xf32>
    %45 = arith.addf %43, %44 : vector<16x32xf32>
    %46 = arith.addf %1, %45 : vector<16x32xf32>
    %cst_20 = arith.constant dense<0.000000e+00> : vector<16xf32>
    %47 = vector.multi_reduction <add>, %46, %cst_20 [1] : vector<16x32xf32> to vector<16xf32>
    %48 = vector.shape_cast %47 : vector<16xf32> to vector<16x1xf32>
    %cst_21 = arith.constant 3.200000e+01 : f32
    %49 = vector.broadcast %cst_21 : f32 to vector<16x1xf32>
    %50 = arith.divf %48, %49 : vector<16x1xf32>
    %51 = vector.broadcast %50 : vector<16x1xf32> to vector<16x32xf32>
    %52 = arith.subf %46, %51 : vector<16x32xf32>
    %53 = arith.mulf %52, %52 : vector<16x32xf32>
    %cst_22 = arith.constant dense<0.000000e+00> : vector<16xf32>
    %54 = vector.multi_reduction <add>, %53, %cst_22 [1] : vector<16x32xf32> to vector<16xf32>
    %55 = vector.shape_cast %54 : vector<16xf32> to vector<16x1xf32>
    %cst_23 = arith.constant 3.200000e+01 : f32
    %56 = vector.broadcast %cst_23 : f32 to vector<16x1xf32>
    %57 = arith.divf %55, %56 : vector<16x1xf32>
    %58 = vector.broadcast %50 : vector<16x1xf32> to vector<16x32xf32>
    %59 = arith.subf %46, %58 : vector<16x32xf32>
    %cst_24 = arith.constant 9.99999974E-6 : f32
    %60 = vector.broadcast %cst_24 : f32 to vector<16x1xf32>
    %61 = arith.addf %57, %60 : vector<16x1xf32>
    %62 = math.rsqrt %61 : vector<16x1xf32>
    %63 = vector.broadcast %62 : vector<16x1xf32> to vector<16x32xf32>
    %64 = arith.mulf %59, %63 : vector<16x32xf32>
    %65 = vector.broadcast %8 : vector<1x32xf32> to vector<16x32xf32>
    %66 = arith.mulf %64, %65 : vector<16x32xf32>
    %67 = vector.broadcast %9 : vector<1x32xf32> to vector<16x32xf32>
    %68 = arith.addf %66, %67 : vector<16x32xf32>
    %cst_25 = arith.constant dense<0.000000e+00> : vector<16x64xf32>
    %69 = tpu.matmul %68, %4, %cst_25 {dimension_numbers = #tpu.dot_dimension_numbers<[1], [0], [0], [1], [0, 0, 1, 1], [], []>} : vector<16x32xf32>, vector<32x64xf32>, vector<16x64xf32> -> vector<16x64xf32>
    %70 = vector.broadcast %12 : vector<1x64xf32> to vector<16x64xf32>
    %71 = arith.addf %69, %70 : vector<16x64xf32>
    %cst_26 = arith.constant 0.000000e+00 : f32
    %72 = vector.broadcast %cst_26 : f32 to vector<16x64xf32>
    %73 = arith.maximumf %71, %72 : vector<16x64xf32>
    %cst_27 = arith.constant dense<0.000000e+00> : vector<16x32xf32>
    %74 = tpu.matmul %73, %5, %cst_27 {dimension_numbers = #tpu.dot_dimension_numbers<[1], [0], [0], [1], [0, 0, 1, 1], [], []>} : vector<16x64xf32>, vector<64x32xf32>, vector<16x32xf32> -> vector<16x32xf32>
    %75 = vector.broadcast %13 : vector<1x32xf32> to vector<16x32xf32>
    %76 = arith.addf %74, %75 : vector<16x32xf32>
    %77 = arith.addf %68, %76 : vector<16x32xf32>
    %cst_28 = arith.constant dense<0.000000e+00> : vector<16xf32>
    %78 = vector.multi_reduction <add>, %77, %cst_28 [1] : vector<16x32xf32> to vector<16xf32>
    %79 = vector.shape_cast %78 : vector<16xf32> to vector<16x1xf32>
    %cst_29 = arith.constant 3.200000e+01 : f32
    %80 = vector.broadcast %cst_29 : f32 to vector<16x1xf32>
    %81 = arith.divf %79, %80 : vector<16x1xf32>
    %82 = vector.broadcast %81 : vector<16x1xf32> to vector<16x32xf32>
    %83 = arith.subf %77, %82 : vector<16x32xf32>
    %84 = arith.mulf %83, %83 : vector<16x32xf32>
    %cst_30 = arith.constant dense<0.000000e+00> : vector<16xf32>
    %85 = vector.multi_reduction <add>, %84, %cst_30 [1] : vector<16x32xf32> to vector<16xf32>
    %86 = vector.shape_cast %85 : vector<16xf32> to vector<16x1xf32>
    %cst_31 = arith.constant 3.200000e+01 : f32
    %87 = vector.broadcast %cst_31 : f32 to vector<16x1xf32>
    %88 = arith.divf %86, %87 : vector<16x1xf32>
    %89 = vector.broadcast %81 : vector<16x1xf32> to vector<16x32xf32>
    %90 = arith.subf %77, %89 : vector<16x32xf32>
    %cst_32 = arith.constant 9.99999974E-6 : f32
    %91 = vector.broadcast %cst_32 : f32 to vector<16x1xf32>
    %92 = arith.addf %88, %91 : vector<16x1xf32>
    %93 = math.rsqrt %92 : vector<16x1xf32>
    %94 = vector.broadcast %93 : vector<16x1xf32> to vector<16x32xf32>
    %95 = arith.mulf %90, %94 : vector<16x32xf32>
    %96 = vector.broadcast %10 : vector<1x32xf32> to vector<16x32xf32>
    %97 = arith.mulf %95, %96 : vector<16x32xf32>
    %98 = vector.broadcast %11 : vector<1x32xf32> to vector<16x32xf32>
    %99 = arith.addf %97, %98 : vector<16x32xf32>
    %c168 = arith.constant 168 : index
    %c0_33 = arith.constant 0 : index
    %100 = vector.load %arg2[%c168, %c0_33] : memref<336x96xf32, #tpu.memory_space<vmem>>, vector<32x96xf32>
    %c200 = arith.constant 200 : index
    %c0_34 = arith.constant 0 : index
    %101 = vector.load %arg2[%c200, %c0_34] : memref<336x96xf32, #tpu.memory_space<vmem>>, vector<32x32xf32>
    %c232 = arith.constant 232 : index
    %c0_35 = arith.constant 0 : index
    %102 = vector.load %arg2[%c232, %c0_35] : memref<336x96xf32, #tpu.memory_space<vmem>>, vector<32x64xf32>
    %c264 = arith.constant 264 : index
    %c0_36 = arith.constant 0 : index
    %103 = vector.load %arg2[%c264, %c0_36] : memref<336x96xf32, #tpu.memory_space<vmem>>, vector<64x32xf32>
    %c328 = arith.constant 328 : index
    %c0_37 = arith.constant 0 : index
    %104 = vector.load %arg2[%c328, %c0_37] : memref<336x96xf32, #tpu.memory_space<vmem>>, vector<1x96xf32>
    %c329 = arith.constant 329 : index
    %c0_38 = arith.constant 0 : index
    %105 = vector.load %arg2[%c329, %c0_38] : memref<336x96xf32, #tpu.memory_space<vmem>>, vector<1x32xf32>
    %c330 = arith.constant 330 : index
    %c0_39 = arith.constant 0 : index
    %106 = vector.load %arg2[%c330, %c0_39] : memref<336x96xf32, #tpu.memory_space<vmem>>, vector<1x32xf32>
    %c331 = arith.constant 331 : index
    %c0_40 = arith.constant 0 : index
    %107 = vector.load %arg2[%c331, %c0_40] : memref<336x96xf32, #tpu.memory_space<vmem>>, vector<1x32xf32>
    %c332 = arith.constant 332 : index
    %c0_41 = arith.constant 0 : index
    %108 = vector.load %arg2[%c332, %c0_41] : memref<336x96xf32, #tpu.memory_space<vmem>>, vector<1x32xf32>
    %c333 = arith.constant 333 : index
    %c0_42 = arith.constant 0 : index
    %109 = vector.load %arg2[%c333, %c0_42] : memref<336x96xf32, #tpu.memory_space<vmem>>, vector<1x32xf32>
    %c334 = arith.constant 334 : index
    %c0_43 = arith.constant 0 : index
    %110 = vector.load %arg2[%c334, %c0_43] : memref<336x96xf32, #tpu.memory_space<vmem>>, vector<1x64xf32>
    %c335 = arith.constant 335 : index
    %c0_44 = arith.constant 0 : index
    %111 = vector.load %arg2[%c335, %c0_44] : memref<336x96xf32, #tpu.memory_space<vmem>>, vector<1x32xf32>
    %cst_45 = arith.constant dense<0.000000e+00> : vector<16x96xf32>
    %112 = tpu.matmul %99, %100, %cst_45 {dimension_numbers = #tpu.dot_dimension_numbers<[1], [0], [0], [1], [0, 0, 1, 1], [], []>} : vector<16x32xf32>, vector<32x96xf32>, vector<16x96xf32> -> vector<16x96xf32>
    %113 = vector.broadcast %104 : vector<1x96xf32> to vector<16x96xf32>
    %114 = arith.addf %112, %113 : vector<16x96xf32>
    %115 = vector.extract_strided_slice %114 {offsets = [0, 0], sizes = [16, 32], strides = [1, 1]} : vector<16x96xf32> to vector<16x32xf32>
    %116 = vector.shape_cast %115 : vector<16x32xf32> to vector<16x4x8xf32>
    %117 = tpu.transpose %116, [1, 0, 2] : vector<16x4x8xf32> -> vector<4x16x8xf32>
    %118 = vector.shape_cast %117 : vector<4x16x8xf32> to vector<8x8x8xf32>
    %119 = vector.extract_strided_slice %114 {offsets = [0, 32], sizes = [16, 32], strides = [1, 1]} : vector<16x96xf32> to vector<16x32xf32>
    %120 = vector.shape_cast %119 : vector<16x32xf32> to vector<16x4x8xf32>
    %121 = tpu.transpose %120, [1, 0, 2] : vector<16x4x8xf32> -> vector<4x16x8xf32>
    %122 = vector.shape_cast %121 : vector<4x16x8xf32> to vector<8x8x8xf32>
    %123 = vector.extract_strided_slice %114 {offsets = [0, 64], sizes = [16, 32], strides = [1, 1]} : vector<16x96xf32> to vector<16x32xf32>
    %124 = vector.shape_cast %123 : vector<16x32xf32> to vector<16x4x8xf32>
    %125 = tpu.transpose %124, [1, 0, 2] : vector<16x4x8xf32> -> vector<4x16x8xf32>
    %126 = vector.shape_cast %125 : vector<4x16x8xf32> to vector<8x8x8xf32>
    "tpu.trace_start"() <{level = 10 : i32, message = "gqd,gkd->gqk"}> : () -> ()
    %cst_46 = arith.constant dense<0.000000e+00> : vector<8x8x8xf32>
    %127 = tpu.matmul %118, %122, %cst_46 {dimension_numbers = #tpu.dot_dimension_numbers<[2], [2], [1], [1], [0, 0, 0, 1, 1, 1], [0], [0]>} : vector<8x8x8xf32>, vector<8x8x8xf32>, vector<8x8x8xf32> -> vector<8x8x8xf32>
    "tpu.trace_stop"() : () -> ()
    %cst_47 = arith.constant dense<0xFF800000> : vector<8x8xf32>
    %128 = vector.multi_reduction <maximumf>, %127, %cst_47 [2] : vector<8x8x8xf32> to vector<8x8xf32>
    %129 = vector.shape_cast %128 : vector<8x8xf32> to vector<8x8x1xf32>
    %130 = vector.broadcast %129 : vector<8x8x1xf32> to vector<8x8x8xf32>
    %131 = arith.subf %127, %130 : vector<8x8x8xf32>
    %132 = math.exp %131 : vector<8x8x8xf32>
    %cst_48 = arith.constant dense<0.000000e+00> : vector<8x8xf32>
    %133 = vector.multi_reduction <add>, %132, %cst_48 [2] : vector<8x8x8xf32> to vector<8x8xf32>
    %134 = vector.shape_cast %133 : vector<8x8xf32> to vector<8x8x1xf32>
    %135 = vector.broadcast %134 : vector<8x8x1xf32> to vector<8x8x8xf32>
    %136 = arith.divf %132, %135 : vector<8x8x8xf32>
    "tpu.trace_start"() <{level = 10 : i32, message = "gqk,gkd->gqd"}> : () -> ()
    %cst_49 = arith.constant dense<0.000000e+00> : vector<8x8x8xf32>
    %137 = tpu.matmul %136, %126, %cst_49 {dimension_numbers = #tpu.dot_dimension_numbers<[2], [1], [1], [2], [0, 0, 0, 1, 1, 2], [0], [0]>} : vector<8x8x8xf32>, vector<8x8x8xf32>, vector<8x8x8xf32> -> vector<8x8x8xf32>
    "tpu.trace_stop"() : () -> ()
    %138 = vector.shape_cast %137 : vector<8x8x8xf32> to vector<4x16x8xf32>
    %139 = tpu.transpose %138, [1, 0, 2] : vector<4x16x8xf32> -> vector<16x4x8xf32>
    %140 = vector.shape_cast %139 : vector<16x4x8xf32> to vector<16x32xf32>
    %cst_50 = arith.constant dense<0.000000e+00> : vector<16x32xf32>
    %141 = tpu.matmul %140, %101, %cst_50 {dimension_numbers = #tpu.dot_dimension_numbers<[1], [0], [0], [1], [0, 0, 1, 1], [], []>} : vector<16x32xf32>, vector<32x32xf32>, vector<16x32xf32> -> vector<16x32xf32>
    %142 = vector.broadcast %105 : vector<1x32xf32> to vector<16x32xf32>
    %143 = arith.addf %141, %142 : vector<16x32xf32>
    %144 = arith.addf %99, %143 : vector<16x32xf32>
    %cst_51 = arith.constant dense<0.000000e+00> : vector<16xf32>
    %145 = vector.multi_reduction <add>, %144, %cst_51 [1] : vector<16x32xf32> to vector<16xf32>
    %146 = vector.shape_cast %145 : vector<16xf32> to vector<16x1xf32>
    %cst_52 = arith.constant 3.200000e+01 : f32
    %147 = vector.broadcast %cst_52 : f32 to vector<16x1xf32>
    %148 = arith.divf %146, %147 : vector<16x1xf32>
    %149 = vector.broadcast %148 : vector<16x1xf32> to vector<16x32xf32>
    %150 = arith.subf %144, %149 : vector<16x32xf32>
    %151 = arith.mulf %150, %150 : vector<16x32xf32>
    %cst_53 = arith.constant dense<0.000000e+00> : vector<16xf32>
    %152 = vector.multi_reduction <add>, %151, %cst_53 [1] : vector<16x32xf32> to vector<16xf32>
    %153 = vector.shape_cast %152 : vector<16xf32> to vector<16x1xf32>
    %cst_54 = arith.constant 3.200000e+01 : f32
    %154 = vector.broadcast %cst_54 : f32 to vector<16x1xf32>
    %155 = arith.divf %153, %154 : vector<16x1xf32>
    %156 = vector.broadcast %148 : vector<16x1xf32> to vector<16x32xf32>
    %157 = arith.subf %144, %156 : vector<16x32xf32>
    %cst_55 = arith.constant 9.99999974E-6 : f32
    %158 = vector.broadcast %cst_55 : f32 to vector<16x1xf32>
    %159 = arith.addf %155, %158 : vector<16x1xf32>
    %160 = math.rsqrt %159 : vector<16x1xf32>
    %161 = vector.broadcast %160 : vector<16x1xf32> to vector<16x32xf32>
    %162 = arith.mulf %157, %161 : vector<16x32xf32>
    %163 = vector.broadcast %106 : vector<1x32xf32> to vector<16x32xf32>
    %164 = arith.mulf %162, %163 : vector<16x32xf32>
    %165 = vector.broadcast %107 : vector<1x32xf32> to vector<16x32xf32>
    %166 = arith.addf %164, %165 : vector<16x32xf32>
    %cst_56 = arith.constant dense<0.000000e+00> : vector<16x64xf32>
    %167 = tpu.matmul %166, %102, %cst_56 {dimension_numbers = #tpu.dot_dimension_numbers<[1], [0], [0], [1], [0, 0, 1, 1], [], []>} : vector<16x32xf32>, vector<32x64xf32>, vector<16x64xf32> -> vector<16x64xf32>
    %168 = vector.broadcast %110 : vector<1x64xf32> to vector<16x64xf32>
    %169 = arith.addf %167, %168 : vector<16x64xf32>
    %cst_57 = arith.constant 0.000000e+00 : f32
    %170 = vector.broadcast %cst_57 : f32 to vector<16x64xf32>
    %171 = arith.maximumf %169, %170 : vector<16x64xf32>
    %cst_58 = arith.constant dense<0.000000e+00> : vector<16x32xf32>
    %172 = tpu.matmul %171, %103, %cst_58 {dimension_numbers = #tpu.dot_dimension_numbers<[1], [0], [0], [1], [0, 0, 1, 1], [], []>} : vector<16x64xf32>, vector<64x32xf32>, vector<16x32xf32> -> vector<16x32xf32>
    %173 = vector.broadcast %111 : vector<1x32xf32> to vector<16x32xf32>
    %174 = arith.addf %172, %173 : vector<16x32xf32>
    %175 = arith.addf %166, %174 : vector<16x32xf32>
    %cst_59 = arith.constant dense<0.000000e+00> : vector<16xf32>
    %176 = vector.multi_reduction <add>, %175, %cst_59 [1] : vector<16x32xf32> to vector<16xf32>
    %177 = vector.shape_cast %176 : vector<16xf32> to vector<16x1xf32>
    %cst_60 = arith.constant 3.200000e+01 : f32
    %178 = vector.broadcast %cst_60 : f32 to vector<16x1xf32>
    %179 = arith.divf %177, %178 : vector<16x1xf32>
    %180 = vector.broadcast %179 : vector<16x1xf32> to vector<16x32xf32>
    %181 = arith.subf %175, %180 : vector<16x32xf32>
    %182 = arith.mulf %181, %181 : vector<16x32xf32>
    %cst_61 = arith.constant dense<0.000000e+00> : vector<16xf32>
    %183 = vector.multi_reduction <add>, %182, %cst_61 [1] : vector<16x32xf32> to vector<16xf32>
    %184 = vector.shape_cast %183 : vector<16xf32> to vector<16x1xf32>
    %cst_62 = arith.constant 3.200000e+01 : f32
    %185 = vector.broadcast %cst_62 : f32 to vector<16x1xf32>
    %186 = arith.divf %184, %185 : vector<16x1xf32>
    %187 = vector.broadcast %179 : vector<16x1xf32> to vector<16x32xf32>
    %188 = arith.subf %175, %187 : vector<16x32xf32>
    %cst_63 = arith.constant 9.99999974E-6 : f32
    %189 = vector.broadcast %cst_63 : f32 to vector<16x1xf32>
    %190 = arith.addf %186, %189 : vector<16x1xf32>
    %191 = math.rsqrt %190 : vector<16x1xf32>
    %192 = vector.broadcast %191 : vector<16x1xf32> to vector<16x32xf32>
    %193 = arith.mulf %188, %192 : vector<16x32xf32>
    %194 = vector.broadcast %108 : vector<1x32xf32> to vector<16x32xf32>
    %195 = arith.mulf %193, %194 : vector<16x32xf32>
    %196 = vector.broadcast %109 : vector<1x32xf32> to vector<16x32xf32>
    %197 = arith.addf %195, %196 : vector<16x32xf32>
    %198 = vector.shape_cast %197 : vector<16x32xf32> to vector<2x8x32xf32>
    %c0_64 = arith.constant 0 : index
    %c0_65 = arith.constant 0 : index
    %c0_66 = arith.constant 0 : index
    %199 = vector.load %arg3[%c0_64, %c0_65, %c0_66] : memref<2x8x32xf32, #tpu.memory_space<vmem>>, vector<2x8x32xf32>
    tpu.vector_store %arg3[%c0_64, %c0_65, %c0_66], %198 {strides = array<i32>} : memref<2x8x32xf32, #tpu.memory_space<vmem>>, vector<2x8x32xf32>,
    return
  }
  func.func @transform_0(%arg0: i32) -> (i32, i32, i32) {
    %c0_i32 = arith.constant 0 : i32
    %c0_i32_0 = arith.constant 0 : i32
    %c0_i32_1 = arith.constant 0 : i32
    return %arg0, %c0_i32, %c0_i32_0 : i32, i32, i32
  }
  func.func @transform_1(%arg0: i32) -> (i32, i32) {
    %c0_i32 = arith.constant 0 : i32
    %c0_i32_0 = arith.constant 0 : i32
    %c0_i32_1 = arith.constant 0 : i32
    return %c0_i32, %c0_i32_0 : i32, i32
  }
  func.func @transform_2(%arg0: i32) -> (i32, i32, i32) {
    %c0_i32 = arith.constant 0 : i32
    %c0_i32_0 = arith.constant 0 : i32
    %c0_i32_1 = arith.constant 0 : i32
    return %arg0, %c0_i32, %c0_i32_0 : i32, i32, i32
  }
}

</mosaic_0001>

<bundles_post_ra>
// kernel: tpu_custom_call.1
= control target key start
LH: loop header
LB: loop body
LE: loop exit
PB: predicated region body
PF: predicated region fallthrough
CT: control target
= control target key end

     0   :  { %vm46_vm0 = vcmask 261120   ;;  %s7661_s0 = inlined_call_operand.vmem [shape: f32[2,8,32], index: 0, kind: input, shape index: {}]   ;;  %s7662_s1 = inlined_call_operand.vmem [shape: f32[336,96], index: 1, kind: input, shape index: {}]   ;;  %s7663_s2 = inlined_call_operand.hbm [shape: f32[2,8,32], index: 2, kind: output, shape index: {}]  }
   0x1   :  { %v14_v0 = vld [vmem:[%s7662_s1] sm:$0xff]  ;;  %v15_v1 = vld [vmem:[%s7662_s1 + $0x8] sm:$0xff]  ;;  %v16_v2 = vld [vmem:[%s7662_s1 + $0x10] sm:$0xff] }
   0x2   :  { %v6366_v3 = vpack.c.bf16 %v15_v1, %v14_v0  ;;  %v17_v4 = vld [vmem:[%s7662_s1 + $0x18] sm:$0xff]  ;;  %v12_v5 = vld [vmem:[%s7661_s0] sm:$0xff] }
   0x3   :  { %v6370_v6 = vpack.c.bf16 %v17_v4, %v16_v2  ;;  %6110 = vmatprep.mubr.msk.f32.mxu1 %vm46_vm0, %v12_v5 }
   0x4   :  { %7 = vsyncpa [#allocation3], 0  ;;  %6367 = vmatprep.subr.bf16.mxu1 %v6366_v3  ;;  %v13_v7 = vld [vmem:[%s7661_s0 + $0x8] sm:$0xff]  ;;  %v5870_v8 = vld [vmem:[%s7662_s1 + $0xa0] ss:$0 sm:$0xff]  ;;  %s6566_s23 = smov 120   ;;  %v153_v22 = vlaneseq }
   0x5   :  { %6369 = vmatpush3.bf16.msra.mxu1 %v6366_v3  ;;  %s6567_s24 = smov 104   ;;  %s6568_s25 = smov 112   ;;  %v6570_v19 = vmov 0.0   ;;  %vm6571_vm1 = vmmov 0   ;;  %v6572_v20 = vmov 1983009808  }
   0x6   :  { %6371 = vmatprep.subr.bf16.mxu1 %v6370_v6  ;;  %s6569_s26 = smov 96   ;;  %6123 = vmatprep.subr.mxu0 %v6570_v19  ;;  %v151_v21 = vunpack.c.l.s4 %v6572_v20  ;;  %v154_v24 = vshrl.u32 %v153_v22, 7  ;;  %v6573_v25 = vmov 1934713408   ;;  %vm1012_vm2 = vcmask 64512   ;;  %s6574_s27 = smov 64  }
   0x7   :  { %6125 = vmatprep.mubr.msk.f32.mxu0 %vm6571_vm1, %v6570_v19  ;;  %v183_v26 = vunpack.c.l.s4 %v6573_v25  ;;  %s6575_s4 = smov 8   ;;  %s6576_s5 = smov 16   ;;  %vm2591_vm3 = vcmask 130048   ;;  %vm2594_vm4 = vcmask 195584   ;;  %vm2814_vm5 = vcmask 523264  }
   0x8   :  { %v152_v23 = vunpack.c.0.s8 %v151_v21  ;;  %s6577_s10 = smov 24   ;;  %s6578_s11 = smov [#allocation2]  }
   0x9   :  { %6373 = vmatpush3.bf16.msra.mxu1 %v6370_v6  ;;  %v184_v31 = vunpack.c.0.s8 %v183_v26  ;;  %s5859_s12 = sshll.u32 %s6578_s11, 4  ;;  %s5860_s12 = int_to_ptr.vmem [resolvable:$true] %s5859_s12 }
   0xa   :  { %6113 = vmatprep.subr.mxu1 %v6570_v19  ;;  %v6668_v27 = vsub.s32 %v152_v23, %v154_v24  ;;  %s6542_s13 = scalar_lea.vmem %s5860_s12, 256  ;;  %p6547_p1 = scmp.lt.s32.totalorder %s5860_s12, %s5860_s12 }
   0xb   :  { %v6681_v36 = vsub.s32 %v184_v31, %v154_v24  ;;  %p6543_p0 = scmp.ne.s32.totalorder %s5860_s12, %s6542_s13  ;;  %p6548_p2 = scmp.lt.s32.totalorder %s6542_s13, %s6542_s13 }
   0xc   :  { %6111 = vmatmul.mubr.msk.f32.vlgmr.msra.gmra.mrb[0].mxu1 %vm46_vm0, %v13_v7 }
   0xd   :  { %6115 = vmatprep.mubr.msk.f32.mxu1 %vm6571_vm1, %v6570_v19  ;;  %p6549_p3 = por %p6548_p2, %p6547_p1 }
   0xf   :  { %p6550_p4 = pnand %p6549_p3, %p6543_p0 }
  0xdf   :  { %v6112_v9 = vpop.f32.mrb[0].mxu1 }
  0xe0   :  { %v6618_v10 = vadd.f32 %v6112_v9, %v5870_v8  ;;  %v119_v11 = vpop.f32.mrb[1].mxu1 }
  0xe1   :  { %v6620_v12 = vadd.f32 %v5870_v8, %v119_v11 }
  0xe2   :  { %132 = vrot.lane.b32.xlu1 %v6618_v10, %s6566_s23 }
  0xe3   :  { %130 = vrot.lane.b32.xlu0 %v6620_v12, %s6566_s23 }
  0xe6   :  { %142 = vrot.lane.b32.xlu1 %v6620_v12, %s6567_s24 }
  0xe7   :  { %136 = vrot.lane.b32.xlu0 %v6620_v12, %s6568_s25 }
  0xea   :  { %144 = vrot.lane.b32.xlu1 %v6618_v10, %s6567_s24 }
  0xeb   :  { %138 = vrot.lane.b32.xlu0 %v6618_v10, %s6568_s25 }
  0xef   :  { %422 = vrot.lane.b32.xlu0 %v6618_v10, %s6569_s26 }
  0xf3   :  { %420 = vrot.lane.b32.xlu0 %v6620_v12, %s6569_s26 }
 0x154   :  { %v6638_v13 = vpop.permute.xlu1 %132 }
 0x155   :  { %426 = vrot.lane.b32.xlu1 %v6638_v13, %s6569_s26  ;;  %v6642_v14 = vpop.permute.xlu0 %130 }
 0x158   :  { %v6648_v16 = vpop.permute.xlu1 %142 }
 0x159   :  { %424 = vrot.lane.b32.xlu1 %v6642_v14, %s6569_s26  ;;  %v6646_v15 = vpop.permute.xlu0 %136  ;;  %v164_v28 = vcombine.low %v6642_v14, %v6648_v16  ;;  %v165_v30 = vcombine.high %v6642_v14, %v6648_v16 }
 0x15a   :  { %428 = vrot.lane.b32.xlu0 %v6646_v15, %s6569_s26  ;;  %v148_v29 = vcombine.low %v6620_v12, %v6646_v15  ;;  %v149_v32 = vcombine.high %v6620_v12, %v6646_v15 }
 0x15b   :  { %v172_v33 = vrot.slane %v164_v28, %v6668_v27  ;;  %v179_v35 = vrot.slane %v165_v30, %v6668_v27 }
 0x15c   :  { %v6658_v18 = vpop.permute.xlu1 %144  ;;  %v156_v34 = vrot.slane %v148_v29, %v6668_v27  ;;  %v163_v37 = vrot.slane %v149_v32, %v6668_v27 }
 0x15d   :  { %432 = vrot.lane.b32.xlu1 %v6648_v16, %s6569_s26  ;;  %v6654_v17 = vpop.permute.xlu0 %138  ;;  %v232_v40 = vcombine.low %v6638_v13, %v6658_v18  ;;  %v233_v42 = vcombine.high %v6638_v13, %v6658_v18 }
 0x15e   :  { %430 = vrot.lane.b32.xlu0 %v6654_v17, %s6569_s26  ;;  %v180_v38 = vcombine.low %v156_v34, %v172_v33  ;;  %v181_v39 = vcombine.high %v156_v34, %v172_v33  ;;  %v216_v41 = vcombine.low %v6618_v10, %v6654_v17  ;;  %v217_v43 = vcombine.high %v6618_v10, %v6654_v17 }
 0x15f   :  { %v196_v44 = vcombine.low %v163_v37, %v179_v35  ;;  %v197_v45 = vcombine.high %v163_v37, %v179_v35  ;;  %v240_v48 = vrot.slane %v232_v40, %v6668_v27  ;;  %v247_v51 = vrot.slane %v233_v42, %v6668_v27 }
 0x160   :  { %v188_v46 = vrot.slane %v180_v38, %v6681_v36  ;;  %v195_v47 = vrot.slane %v181_v39, %v6681_v36  ;;  %v224_v49 = vrot.slane %v216_v41, %v6668_v27  ;;  %v231_v52 = vrot.slane %v217_v43, %v6668_v27 }
 0x161   :  { %434 = vrot.lane.b32.xlu1 %v6658_v18, %s6569_s26  ;;  %v6696_v50 = vpop.permute.xlu0 %422  ;;  %v204_v53 = vrot.slane %v196_v44, %v6681_v36  ;;  %v211_v54 = vrot.slane %v197_v45, %v6681_v36 }
 0x162   :  { %v284_v55 = vcombine.low %v188_v46, %v195_v47  ;;  %v5873_v56 = vcombine.high %v188_v46, %v195_v47  ;;  %v248_v57 = vcombine.low %v224_v49, %v240_v48  ;;  %v249_v58 = vcombine.high %v224_v49, %v240_v48 }
 0x163   :  { %v264_v59 = vcombine.low %v231_v52, %v247_v51  ;;  %v265_v60 = vcombine.high %v231_v52, %v247_v51  ;;  %v300_v62 = vcombine.low %v204_v53, %v211_v54  ;;  %v5874_v63 = vcombine.high %v204_v53, %v211_v54 }
 0x164   :  { %v256_v1 = vrot.slane %v248_v57, %v6681_v36  ;;  %v263_v2 = vrot.slane %v249_v58, %v6681_v36  ;;  %v6705_v3 = vrot.slane %v284_v55, %v6668_v27  ;;  %v6708_v4 = vrot.slane %v5873_v56, %v6668_v27 }
 0x165   :  { %v421_v0 = vpop.permute.xlu0 %420  ;;  %v272_v5 = vrot.slane %v264_v59, %v6681_v36  ;;  %v279_v6 = vrot.slane %v265_v60, %v6681_v36  ;;  %v6713_v11 = vrot.slane %v300_v62, %v6668_v27  ;;  %v6716_v20 = vrot.slane %v5874_v63, %v6668_v27 }
 0x166   :  { %v352_v9 = vcombine.low %v256_v1, %v263_v2  ;;  %v316_v21 = vcombine.low %v6705_v3, %v6708_v4  ;;  %v5875_v24 = vcombine.high %v256_v1, %v263_v2  ;;  %v317_v32 = vcombine.high %v6705_v3, %v6708_v4 }
 0x167   :  { %v368_v25 = vcombine.low %v272_v5, %v279_v6  ;;  %v5876_v28 = vcombine.high %v272_v5, %v279_v6  ;;  %v332_v34 = vcombine.low %v6713_v11, %v6716_v20  ;;  %v333_v37 = vcombine.high %v6713_v11, %v6716_v20 }
 0x168   :  { %v6723_v33 = vrot.slane %v316_v21, %v6681_v36  ;;  %v6728_v35 = vrot.slane %v352_v9, %v6668_v27  ;;  %v6739_v45 = vrot.slane %v5875_v24, %v6668_v27 }
 0x169   :  { %v6742_v46 = vrot.slane %v368_v25, %v6668_v27  ;;  %v6745_v54 = vrot.slane %v332_v34, %v6681_v36  ;;  %v6748_v55 = vrot.slane %v5876_v28, %v6668_v27 }
 0x1c7   :  { %v427_v61 = vpop.permute.xlu1 %426 }
 0x1cb   :  { %v425_v7 = vpop.permute.xlu1 %424 }
 0x1cc   :  { %v429_v8 = vpop.permute.xlu0 %428 }
 0x1cd   :  { %v444_v22 = vcombine.low %v421_v0, %v429_v8  ;;  %v445_v23 = vcombine.high %v421_v0, %v429_v8 }
 0x1cf   :  { %v433_v26 = vpop.permute.xlu1 %432  ;;  %v452_v38 = vrot.slane %v444_v22, %v6668_v27  ;;  %v459_v39 = vrot.slane %v445_v23, %v6668_v27 }
 0x1d0   :  { %v460_v29 = vcombine.low %v425_v7, %v433_v26  ;;  %v461_v30 = vcombine.high %v425_v7, %v433_v26  ;;  %v431_v31 = vpop.permute.xlu0 %430 }
 0x1d1   :  { %v512_v42 = vcombine.low %v6696_v50, %v431_v31  ;;  %v513_v43 = vcombine.high %v6696_v50, %v431_v31 }
 0x1d2   :  { %v468_v40 = vrot.slane %v460_v29, %v6668_v27  ;;  %v475_v41 = vrot.slane %v461_v30, %v6668_v27 }
 0x1d3   :  { %v435_v44 = vpop.permute.xlu1 %434  ;;  %v520_v59 = vrot.slane %v512_v42, %v6668_v27  ;;  %v527_v60 = vrot.slane %v513_v43, %v6668_v27 }
 0x1d4   :  { %v476_v47 = vcombine.low %v452_v38, %v468_v40  ;;  %v477_v48 = vcombine.high %v452_v38, %v468_v40  ;;  %v492_v49 = vcombine.low %v459_v39, %v475_v41  ;;  %v493_v51 = vcombine.high %v459_v39, %v475_v41 }
 0x1d5   :  { %v528_v52 = vcombine.low %v427_v61, %v435_v44  ;;  %v529_v53 = vcombine.high %v427_v61, %v435_v44  ;;  %v384_v44 = vcombine.low %v6728_v35, %v6739_v45 }
 0x1d6   :  { %v484_v50 = vrot.slane %v476_v47, %v6681_v36  ;;  %v491_v56 = vrot.slane %v477_v48, %v6681_v36  ;;  %v500_v57 = vrot.slane %v492_v49, %v6681_v36  ;;  %v507_v58 = vrot.slane %v493_v51, %v6681_v36 }
 0x1d7   :  { %v536_v61 = vrot.slane %v528_v52, %v6668_v27  ;;  %v543_v62 = vrot.slane %v529_v53, %v6668_v27  ;;  %v400_v47 = vcombine.low %v6742_v46, %v6748_v55  ;;  %v392_v3 = vrot.slane %v384_v44, %v6681_v36 }
 0x1d8   :  { %v580_v63 = vcombine.low %v484_v50, %v491_v56  ;;  %v5877_v0 = vcombine.high %v484_v50, %v491_v56  ;;  %v596_v1 = vcombine.low %v500_v57, %v507_v58  ;;  %v5878_v2 = vcombine.high %v500_v57, %v507_v58 }
 0x1d9   :  { %v544_v5 = vcombine.low %v520_v59, %v536_v61  ;;  %v545_v6 = vcombine.high %v520_v59, %v536_v61  ;;  %v560_v7 = vcombine.low %v527_v60, %v543_v62  ;;  %v561_v8 = vcombine.high %v527_v60, %v543_v62 }
 0x1da   :  { %v587_v9 = vrot.slane %v580_v63, %v6668_v27  ;;  %v595_v21 = vrot.slane %v5877_v0, %v6668_v27  ;;  %v603_v22 = vrot.slane %v596_v1, %v6668_v27  ;;  %v611_v23 = vrot.slane %v5878_v2, %v6668_v27 }
 0x1db   :  { %v552_v24 = vrot.slane %v544_v5, %v6681_v36  ;;  %v559_v25 = vrot.slane %v545_v6, %v6681_v36  ;;  %v568_v26 = vrot.slane %v560_v7, %v6681_v36  ;;  %v575_v28 = vrot.slane %v561_v8, %v6681_v36 }
 0x1dc   :  { %v612_v29 = vcombine.low %v587_v9, %v595_v21  ;;  %v613_v30 = vcombine.high %v587_v9, %v595_v21  ;;  %v628_v31 = vcombine.low %v603_v22, %v611_v23  ;;  %v629_v34 = vcombine.high %v603_v22, %v611_v23 }
 0x1dd   :  { %v648_v38 = vcombine.low %v552_v24, %v559_v25  ;;  %v5879_v39 = vcombine.high %v552_v24, %v559_v25  ;;  %v664_v40 = vcombine.low %v568_v26, %v575_v28  ;;  %v5880_v41 = vcombine.high %v568_v26, %v575_v28 }
 0x1de   :  { %v620_v42 = vrot.slane %v612_v29, %v6681_v36  ;;  %v636_v43 = vrot.slane %v628_v31, %v6681_v36  ;;  %v627_v56 = vrot.slane %v613_v30, %v6681_v36  ;;  %v643_v57 = vrot.slane %v629_v34, %v6681_v36 }
 0x1df   :  { %v655_v48 = vrot.slane %v648_v38, %v6668_v27  ;;  %v663_v49 = vrot.slane %v5879_v39, %v6668_v27  ;;  %v671_v51 = vrot.slane %v664_v40, %v6668_v27  ;;  %v679_v52 = vrot.slane %v5880_v41, %v6668_v27 }
 0x1e0   :  { %v644_v53 = vcombine.low %v620_v42, %v636_v43  ;;  %v645_v50 = vcombine.high %v620_v42, %v636_v43  ;;  %v348_v60 = vcombine.low %v6723_v33, %v6745_v54  ;;  %v331_v61 = vrot.slane %v317_v32, %v6681_v36 }
 0x1e1   :  { %v680_v58 = vcombine.low %v655_v48, %v663_v49  ;;  %v696_v59 = vcombine.low %v671_v51, %v679_v52  ;;  %v347_v62 = vrot.slane %v333_v37, %v6681_v36  ;;  %v349_v63 = vcombine.high %v6723_v33, %v6745_v54 }
 0x1e2   :  { %6114 = vmatpush3.xpose.msk.msra.mxu1 %vm1012_vm2, %v644_v53  ;;  %6124 = vmatpush3.xpose.msk.msra.mxu0 %vm1012_vm2, %v645_v50  ;;  %v646_v2 = vcombine.low %v627_v56, %v643_v57  ;;  %v408_v4 = vrot.slane %v400_v47, %v6681_v36  ;;  %v681_v32 = vcombine.high %v655_v48, %v663_v49 }
 0x1e3   :  { %6118 = vmatprep.subr.mxu1 %v6570_v19  ;;  %6133 = vmatprep.subr.mxu0 %v6570_v19  ;;  %v688_v0 = vrot.slane %v680_v58, %v6681_v36  ;;  %v704_v1 = vrot.slane %v696_v59, %v6681_v36  ;;  %v697_v5 = vcombine.high %v671_v51, %v679_v52 }
 0x1e4   :  { %v350_v20 = vcombine.low %v331_v61, %v347_v62  ;;  %v385_v33 = vcombine.high %v6728_v35, %v6739_v45  ;;  %v416_v37 = vcombine.low %v392_v3, %v408_v4  ;;  %v647_v54 = vcombine.high %v627_v56, %v643_v57 }
 0x1e5   :  { %6116 = vmatmul.mubr.msk.f32.vlgmr.msra.gmra.mrb[2].mxu1 %vm1012_vm2, %v348_v60  ;;  %6126 = vmatmul.mubr.msk.f32.vlgmr.msra.gmra.mrb[0].mxu0 %vm1012_vm2, %v349_v63  ;;  %v712_v11 = vcombine.low %v688_v0, %v704_v1  ;;  %v401_v6 = vcombine.high %v6742_v46, %v6748_v55  ;;  %v713_v7 = vcombine.high %v688_v0, %v704_v1 }
 0x1e6   :  { %6134 = vmatpush3.xpose.msk.msra.mxu0 %vm1012_vm2, %v646_v2  ;;  %6120 = vmatprep.mubr.msk.f32.mxu1 %vm6571_vm1, %v6570_v19  ;;  %v695_v8 = vrot.slane %v681_v32, %v6681_v36  ;;  %v711_v9 = vrot.slane %v697_v5, %v6681_v36  ;;  %v351_v35 = vcombine.high %v331_v61, %v347_v62 }
 0x1e7   :  { %6119 = vmatpush3.xpose.msk.msra.mxu1 %vm1012_vm2, %v712_v11  ;;  %6135 = vmatprep.mubr.msk.f32.mxu0 %vm6571_vm1, %v6570_v19  ;;  %v417_v45 = vcombine.high %v392_v3, %v408_v4  ;;  %v399_v46 = vrot.slane %v385_v33, %v6681_v36  ;;  %v415_v55 = vrot.slane %v401_v6, %v6681_v36 }
 0x1e8   :  { %6128 = vmatprep.subr.mxu1 %v6570_v19  ;;  %6143 = vmatprep.subr.mxu0 %v6570_v19  ;;  %v714_v21 = vcombine.low %v695_v8, %v711_v9  ;;  %v715_v23 = vcombine.high %v695_v8, %v711_v9 }
 0x1e9   :  { %6136 = vmatmul.mubr.msk.f32.vlgmr.msra.gmra.mrb[2].mxu0 %vm1012_vm2, %v350_v20  ;;  %v418_v22 = vcombine.low %v399_v46, %v415_v55  ;;  %v419_v24 = vcombine.high %v399_v46, %v415_v55 }
 0x1ea   :  { %6121 = vmatmul.mubr.msk.f32.vlgmr.msra.gmra.mrb[4].mxu1 %vm1012_vm2, %v416_v37  ;;  %6144 = vmatpush3.xpose.msk.msra.mxu0 %vm1012_vm2, %v647_v54 }
 0x1eb   :  { %6129 = vmatpush3.xpose.msk.msra.mxu1 %vm1012_vm2, %v713_v7  ;;  %6130 = vmatprep.mubr.msk.f32.mxu1 %vm6571_vm1, %v6570_v19 }
 0x1ec   :  { %6145 = vmatprep.mubr.msk.f32.mxu0 %vm6571_vm1, %v6570_v19  ;;  %6138 = vmatprep.subr.mxu1 %v6570_v19 }
 0x1ed   :  { %6146 = vmatmul.mubr.msk.f32.vlgmr.msra.gmra.mrb[4].mxu0 %vm1012_vm2, %v351_v35  ;;  %6153 = vmatprep.subr.mxu0 %v6570_v19 }
 0x1ee   :  { %6131 = vmatmul.mubr.msk.f32.vlgmr.msra.gmra.mrb[6].mxu1 %vm1012_vm2, %v417_v45  ;;  %6155 = vmatprep.mubr.msk.f32.mxu0 %vm6571_vm1, %v6570_v19 }
 0x1ef   :  { %6139 = vmatpush3.xpose.msk.msra.mxu1 %vm1012_vm2, %v714_v21  ;;  %6140 = vmatprep.mubr.msk.f32.mxu1 %vm6571_vm1, %v6570_v19 }
 0x1f0   :  { %6148 = vmatprep.subr.mxu1 %v6570_v19 }
 0x1f2   :  { %6141 = vmatmul.mubr.msk.f32.vlgmr.msra.gmra.mrb[8].mxu1 %vm1012_vm2, %v418_v22 }
 0x1f3   :  { %6149 = vmatpush3.xpose.msk.msra.mxu1 %vm1012_vm2, %v715_v23  ;;  %6150 = vmatprep.mubr.msk.f32.mxu1 %vm6571_vm1, %v6570_v19 }
 0x1f4   :  { %6158 = vmatprep.subr.mxu1 %v6570_v19 }
 0x1f6   :  { %6151 = vmatmul.mubr.msk.f32.vlgmr.msra.gmra.mrb[10].mxu1 %vm1012_vm2, %v419_v24 }
 0x1f7   :  { %6160 = vmatprep.mubr.msk.f32.mxu1 %vm6571_vm1, %v6570_v19 }
 0x2b8   :  { %v1085_v25 = vpop.f32.mrb[2].mxu1  ;;  %v1237_v26 = vpop.f32.mrb[0].mxu0 }
 0x2b9   :  { %v6117_v28 = vpop.f32.mrb[3].mxu1  ;;  %v6127_v29 = vpop.f32.mrb[1].mxu0  ;;  %v1621_v30 = vsel %vm1012_vm2, %v1085_v25, -inf  ;;  %v1627_v39 = vsel %vm1012_vm2, %v1237_v26, -inf }
 0x2ba   :  { %1622 = vmax.xlane.f32.xlu0 %v1621_v30 }
 0x2bc   :  { %v1389_v31 = vpop.f32.mrb[2].mxu0 }
 0x2bd   :  { %v1161_v34 = vpop.f32.mrb[4].mxu1  ;;  %v6137_v38 = vpop.f32.mrb[3].mxu0  ;;  %v1633_v48 = vsel %vm1012_vm2, %v1389_v31, -inf }
 0x2be   :  { %v6122_v40 = vpop.f32.mrb[5].mxu1  ;;  %1628 = vmax.xlane.f32.xlu0 %v1627_v39  ;;  %v1624_v41 = vsel %vm1012_vm2, %v1161_v34, -inf }
 0x2bf   :  { %1625 = vmax.xlane.f32.xlu1 %v1624_v41 }
 0x2c0   :  { %v1541_v42 = vpop.f32.mrb[4].mxu0 }
 0x2c1   :  { %v1313_v43 = vpop.f32.mrb[6].mxu1  ;;  %v6147_v44 = vpop.f32.mrb[5].mxu0  ;;  %v1639_v53 = vsel %vm1012_vm2, %v1541_v42, -inf }
 0x2c2   :  { %v6132_v47 = vpop.f32.mrb[7].mxu1  ;;  %v1630_v49 = vsel %vm1012_vm2, %v1313_v43, -inf }
 0x2c3   :  { %1634 = vmax.xlane.f32.xlu1 %v1633_v48  ;;  %1631 = vmax.xlane.f32.xlu0 %v1630_v49 }
 0x2c5   :  { %v6847_v51 = vpop.f32.mrb[8].mxu1 }
 0x2c6   :  { %v6142_v52 = vpop.f32.mrb[9].mxu1  ;;  %v1636_v50 = vsel %vm1012_vm2, %v6847_v51, -inf }
 0x2c7   :  { %1640 = vmax.xlane.f32.xlu1 %v1639_v53  ;;  %1637 = vmax.xlane.f32.xlu0 %v1636_v50 }
 0x2c9   :  { %v1617_v56 = vpop.f32.mrb[10].mxu1 }
 0x2ca   :  { %v6152_v57 = vpop.f32.mrb[11].mxu1  ;;  %v1642_v58 = vsel %vm1012_vm2, %v1617_v56, -inf }
 0x2cb   :  { %1643 = vmax.xlane.f32.xlu0 %v1642_v58 }
 0x2d8   :  { %716 = vrot.lane.b32.xlu1 %v6620_v12, %s6574_s27 }
 0x2dc   :  { %724 = vrot.lane.b32.xlu1 %v6646_v15, %s6574_s27 }
 0x2e0   :  { %728 = vrot.lane.b32.xlu1 %v6648_v16, %s6574_s27 }
 0x2e1   :  { %720 = vrot.lane.b32.xlu0 %v6642_v14, %s6574_s27 }
 0x2e4   :  { %718 = vrot.lane.b32.xlu1 %v6618_v10, %s6574_s27 }
 0x2e8   :  { %722 = vrot.lane.b32.xlu1 %v6638_v13, %s6574_s27 }
 0x2ec   :  { %726 = vrot.lane.b32.xlu1 %v6654_v17, %s6574_s27 }
 0x347   :  { %v1623_v59 = vpop.xlane.xlu0 %1622 }
 0x348   :  { %v1645_v12 = vsub.f32 %v1085_v25, %v1623_v59 }
 0x34a   :  { %v1653_v60 = vmul.f32 1.442695, %v1645_v12 }
 0x34b   :  { %v1629_v61 = vpop.xlane.xlu0 %1628 }
 0x34c   :  { %6460 = vpow2.f32 %v1653_v60  ;;  %v1626_v15 = vpop.xlane.xlu1 %1625  ;;  %v1647_v62 = vsub.f32 %v1237_v26, %v1629_v61 }
 0x34d   :  { %v1646_v16 = vsub.f32 %v1161_v34, %v1626_v15 }
 0x34e   :  { %v1657_v63 = vmul.f32 1.442695, %v1647_v62 }
 0x34f   :  { %v1655_v0 = vmul.f32 1.442695, %v1646_v16 }
 0x350   :  { %6462 = vpow2.f32 %v1657_v63  ;;  %v1635_v14 = vpop.xlane.xlu1 %1634  ;;  %v1632_v1 = vpop.xlane.xlu0 %1631 }
 0x351   :  { %6464 = vpow2.f32 %v1655_v0  ;;  %v1649_v10 = vsub.f32 %v1389_v31, %v1635_v14  ;;  %v1648_v2 = vsub.f32 %v1313_v43, %v1632_v1 }
 0x353   :  { %v1661_v13 = vmul.f32 1.442695, %v1649_v10  ;;  %v1659_v3 = vmul.f32 1.442695, %v1648_v2 }
 0x354   :  { %v1641_v4 = vpop.xlane.xlu1 %1640  ;;  %v6867_v17 = vpop.xlane.xlu0 %1637 }
 0x355   :  { %6466 = vpow2.f32 %v1661_v13  ;;  %v1651_v32 = vsub.f32 %v1541_v42, %v1641_v4 }
 0x356   :  { %v6869_v5 = vpop.eup %6460  ;;  %6468 = vpow2.f32 %v1659_v3 }
 0x357   :  { %v1665_v11 = vmul.f32 1.442695, %v1651_v32  ;;  %v1669_v20 = vsel %vm1012_vm2, %v6869_v5, 0.0  ;;  %v1650_v32 = vsub.f32 %v6847_v51, %v6867_v17 }
 0x358   :  { %v717_v33 = vpop.permute.xlu1 %716  ;;  %v1644_v37 = vpop.xlane.xlu0 %1643  ;;  %1670 = vadd.xlane.f32.xlu1 %v1669_v20 }
 0x359   :  { %v1652_v54 = vsub.f32 %v1617_v56, %v1644_v37  ;;  %6470 = vpow2.f32 %v1665_v11  ;;  %v1663_v11 = vmul.f32 1.442695, %v1650_v32 }
 0x35a   :  { %v6873_v6 = vpop.eup %6462 }
 0x35b   :  { %v6875_v7 = vpop.eup %6464  ;;  %v1667_v8 = vmul.f32 1.442695, %v1652_v54  ;;  %v1675_v9 = vsel %vm1012_vm2, %v6873_v6, 0.0 }
 0x35c   :  { %v725_v35 = vpop.permute.xlu1 %724  ;;  %v1672_v45 = vsel %vm1012_vm2, %v6875_v7, 0.0  ;;  %1676 = vadd.xlane.f32.xlu1 %v1675_v9  ;;  %v721_v22 = vpop.permute.xlu0 %720 }
 0x35d   :  { %1673 = vadd.xlane.f32.xlu0 %v1672_v45  ;;  %6472 = vpow2.f32 %v1667_v8  ;;  %v740_v55 = vcombine.low %v717_v33, %v725_v35  ;;  %v741_v21 = vcombine.high %v717_v33, %v725_v35 }
 0x35e   :  { %6474 = vpow2.f32 %v1663_v11 }
 0x35f   :  { %v6881_v46 = vpop.eup %6466  ;;  %v748_v29 = vrot.slane %v740_v55, %v6668_v27  ;;  %v755_v30 = vrot.slane %v741_v21, %v6668_v27 }
 0x360   :  { %v729_v23 = vpop.permute.xlu1 %728  ;;  %v1681_v24 = vsel %vm1012_vm2, %v6881_v46, 0.0  ;;  %v6885_v25 = vpop.eup %6468 }
 0x361   :  { %v756_v26 = vcombine.low %v721_v22, %v729_v23  ;;  %v757_v28 = vcombine.high %v721_v22, %v729_v23  ;;  %1682 = vadd.xlane.f32.xlu0 %v1681_v24  ;;  %v1678_v38 = vsel %vm1012_vm2, %v6885_v25, 0.0 }
 0x363   :  { %v764_v31 = vrot.slane %v756_v26, %v6668_v27  ;;  %v771_v34 = vrot.slane %v757_v28, %v6668_v27  ;;  %v6893_v39 = vpop.eup %6470 }
 0x364   :  { %v1687_v52 = vsel %vm1012_vm2, %v6893_v39, 0.0  ;;  %v719_v37 = vpop.permute.xlu1 %718 }
 0x365   :  { %v772_v40 = vcombine.low %v748_v29, %v764_v31  ;;  %v773_v41 = vcombine.high %v748_v29, %v764_v31  ;;  %v788_v42 = vcombine.low %v755_v30, %v771_v34  ;;  %v789_v43 = vcombine.high %v755_v30, %v771_v34  ;;  %1679 = vadd.xlane.f32.xlu0 %v1678_v38 }
 0x367   :  { %v780_v44 = vrot.slane %v772_v40, %v6681_v36  ;;  %v787_v47 = vrot.slane %v773_v41, %v6681_v36  ;;  %v796_v48 = vrot.slane %v788_v42, %v6681_v36  ;;  %v803_v49 = vrot.slane %v789_v43, %v6681_v36  ;;  %v6901_v53 = vpop.eup %6472 }
 0x368   :  { %v1690_v15 = vsel %vm1012_vm2, %v6901_v53, 0.0  ;;  %v6926_v20 = vpop.eup %6474  ;;  %v723_v54 = vpop.permute.xlu1 %722 }
 0x369   :  { %v876_v50 = vcombine.low %v780_v44, %v787_v47  ;;  %v5881_v56 = vcombine.high %v780_v44, %v787_v47  ;;  %v892_v57 = vcombine.low %v796_v48, %v803_v49  ;;  %v5882_v58 = vcombine.high %v796_v48, %v803_v49  ;;  %1688 = vadd.xlane.f32.xlu0 %v1687_v52 }
 0x36a   :  { %v1684_v33 = vsel %vm1012_vm2, %v6926_v20, 0.0 }
 0x36b   :  { %v883_v59 = vrot.slane %v876_v50, %v6668_v27  ;;  %v891_v12 = vrot.slane %v5881_v56, %v6668_v27  ;;  %v899_v60 = vrot.slane %v892_v57, %v6668_v27  ;;  %v907_v61 = vrot.slane %v5882_v58, %v6668_v27 }
 0x36c   :  { %v727_v8 = vpop.permute.xlu1 %726 }
 0x36d   :  { %1691 = vadd.xlane.f32.xlu0 %v1690_v15  ;;  %730 = vrot.lane.b32.xlu1 %v6658_v18, %s6574_s27  ;;  %v908_v62 = vcombine.low %v883_v59, %v891_v12  ;;  %v924_v16 = vcombine.low %v899_v60, %v907_v61  ;;  %v909_v63 = vcombine.high %v883_v59, %v891_v12 }
 0x36e   :  { %v925_v0 = vcombine.high %v899_v60, %v907_v61  ;;  %v808_v55 = vcombine.low %v719_v37, %v727_v8  ;;  %v809_v21 = vcombine.high %v719_v37, %v727_v8 }
 0x36f   :  { %v916_v14 = vrot.slane %v908_v62, %v6681_v36  ;;  %v932_v1 = vrot.slane %v924_v16, %v6681_v36  ;;  %v6914_v10 = vrot.slane %v909_v63, %v6681_v36 }
 0x370   :  { %v6917_v2 = vrot.slane %v925_v0, %v6681_v36  ;;  %v816_v26 = vrot.slane %v808_v55, %v6668_v27  ;;  %v823_v28 = vrot.slane %v809_v21, %v6668_v27 }
 0x371   :  { %v940_v13 = vcombine.low %v916_v14, %v932_v1  ;;  %v941_v3 = vcombine.high %v916_v14, %v932_v1 }
 0x372   :  { %v942_v4 = vcombine.low %v6914_v10, %v6917_v2  ;;  %v943_v18 = vcombine.high %v6914_v10, %v6917_v2 }
 0x373   :  { %6154 = vmatpush3.msra.mxu0 %v940_v13 }
 0x374   :  { %6163 = vmatprep.subr.mxu0 %v6570_v19 }
 0x391   :  { %1685 = vadd.xlane.f32.xlu1 %v1684_v33 }
 0x3e5   :  { %v1671_v9 = vpop.xlane.xlu1 %1670 }
 0x3e6   :  { %6476 = vrcp.f32 %v1671_v9 }
 0x3e9   :  { %v1677_v35 = vpop.xlane.xlu1 %1676 }
 0x3ea   :  { %6478 = vrcp.f32 %v1677_v35  ;;  %v1674_v45 = vpop.xlane.xlu0 %1673 }
 0x3ed   :  { %v731_v22 = vpop.permute.xlu1 %730 }
 0x3ee   :  { %v824_v51 = vcombine.low %v723_v54, %v731_v22  ;;  %v825_v17 = vcombine.high %v723_v54, %v731_v22  ;;  %v1683_v23 = vpop.xlane.xlu0 %1682 }
 0x3ef   :  { %6480 = vrcp.f32 %v1683_v23 }
 0x3f0   :  { %v6477_v24 = vpop.eup %6476  ;;  %v832_v29 = vrot.slane %v824_v51, %v6668_v27  ;;  %v839_v30 = vrot.slane %v825_v17, %v6668_v27  ;;  %6482 = vrcp.f32 %v1674_v45 }
 0x3f1   :  { %v1694_v31 = vmul.f32 %v6477_v24, %v6869_v5 }
 0x3f2   :  { %v840_v34 = vcombine.low %v816_v26, %v832_v29  ;;  %v841_v38 = vcombine.high %v816_v26, %v832_v29  ;;  %v856_v40 = vcombine.low %v823_v28, %v839_v30  ;;  %v857_v41 = vcombine.high %v823_v28, %v839_v30  ;;  %v1680_v42 = vpop.xlane.xlu0 %1679 }
 0x3f3   :  { %6156 = vmatmul.mubr.msk.f32.vlgmr.msra.gmra.mrb[6].mxu0 %vm1012_vm2, %v1694_v31  ;;  %6484 = vrcp.f32 %v1680_v42 }
 0x3f4   :  { %v6479_v43 = vpop.eup %6478  ;;  %v848_v44 = vrot.slane %v840_v34, %v6681_v36  ;;  %v855_v47 = vrot.slane %v841_v38, %v6681_v36  ;;  %v864_v48 = vrot.slane %v856_v40, %v6681_v36  ;;  %v871_v49 = vrot.slane %v857_v41, %v6681_v36  ;;  %6164 = vmatpush3.msra.mxu0 %v941_v3 }
 0x3f5   :  { %v1698_v5 = vmul.f32 %v6479_v43, %v6873_v6  ;;  %6165 = vmatprep.mubr.msk.f32.mxu0 %vm6571_vm1, %v6570_v19  ;;  %6173 = vmatprep.subr.mxu0 %v6570_v19 }
 0x3f6   :  { %v944_v52 = vcombine.low %v848_v44, %v855_v47  ;;  %v5883_v50 = vcombine.high %v848_v44, %v855_v47  ;;  %v960_v56 = vcombine.low %v864_v48, %v871_v49  ;;  %v1689_v57 = vpop.xlane.xlu0 %1688  ;;  %v5884_v58 = vcombine.high %v864_v48, %v871_v49 }
 0x3f7   :  { %6486 = vrcp.f32 %v1689_v57  ;;  %6166 = vmatmul.mubr.msk.f32.vlgmr.msra.gmra.mrb[8].mxu0 %vm1012_vm2, %v1698_v5 }
 0x3f8   :  { %v951_v59 = vrot.slane %v944_v52, %v6668_v27  ;;  %v959_v12 = vrot.slane %v5883_v50, %v6668_v27  ;;  %v967_v6 = vrot.slane %v960_v56, %v6668_v27  ;;  %6174 = vmatpush3.msra.mxu0 %v942_v4  ;;  %6175 = vmatprep.mubr.msk.f32.mxu0 %vm6571_vm1, %v6570_v19 }
 0x3f9   :  { %v6481_v60 = vpop.eup %6480  ;;  %v975_v61 = vrot.slane %v5884_v58, %v6668_v27  ;;  %6183 = vmatprep.subr.mxu0 %v6570_v19 }
 0x3fa   :  { %v1702_v15 = vmul.f32 %v6481_v60, %v6881_v46  ;;  %v976_v62 = vcombine.low %v951_v59, %v959_v12  ;;  %v6483_v0 = vpop.eup %6482  ;;  %v977_v1 = vcombine.high %v951_v59, %v959_v12  ;;  %v18_v12 = vld [vmem:[%s7662_s1 + $0x20] sm:$0xff] }
 0x3fb   :  { %v992_v16 = vcombine.low %v967_v6, %v975_v61  ;;  %v993_v13 = vcombine.high %v967_v6, %v975_v61  ;;  %v1696_v4 = vmul.f32 %v6483_v0, %v6875_v7  ;;  %v19_v6 = vld [vmem:[%s7662_s1 + $0x28] sm:$0xff] }
 0x3fc   :  { %6176 = vmatmul.mubr.msk.f32.vlgmr.msra.gmra.mrb[10].mxu0 %vm1012_vm2, %v1702_v15  ;;  %v984_v63 = vrot.slane %v976_v62, %v6681_v36  ;;  %v991_v33 = vrot.slane %v977_v1, %v6681_v36 }
 0x3fd   :  { %6184 = vmatpush3.msra.mxu0 %v943_v18  ;;  %v1000_v14 = vrot.slane %v992_v16, %v6681_v36  ;;  %6185 = vmatprep.mubr.msk.f32.mxu0 %vm6571_vm1, %v6570_v19  ;;  %v6485_v46 = vpop.eup %6484  ;;  %v1007_v37 = vrot.slane %v993_v13, %v6681_v36  ;;  %v6374_v16 = vpack.c.bf16 %v19_v6, %v18_v12 }
 0x3fe   :  { %v1700_v2 = vmul.f32 %v6485_v46, %v6885_v25 }
 0x3ff   :  { %v1008_v3 = vcombine.low %v984_v63, %v1000_v14  ;;  %v1009_v11 = vcombine.high %v984_v63, %v1000_v14  ;;  %v1010_v7 = vcombine.low %v991_v33, %v1007_v37  ;;  %v1011_v9 = vcombine.high %v991_v33, %v1007_v37  ;;  %6375 = vmatprep.subr.bf16.mxu0 %v6374_v16 }
 0x401   :  { %v6487_v32 = vpop.eup %6486  ;;  %6159 = vmatpush3.msra.mxu1 %v1008_v3 }
 0x402   :  { %v1706_v10 = vmul.f32 %v6487_v32, %v6893_v39  ;;  %6161 = vmatmul.mubr.msk.f32.vlgmr.msra.gmra.mrb[12].mxu1 %vm1012_vm2, %v1696_v4  ;;  %6168 = vmatprep.subr.mxu1 %v6570_v19  ;;  %v1692_v39 = vpop.xlane.xlu0 %1691 }
 0x403   :  { %6169 = vmatpush3.msra.mxu1 %v1009_v11  ;;  %6170 = vmatprep.mubr.msk.f32.mxu1 %vm6571_vm1, %v6570_v19 }
 0x404   :  { %6186 = vmatmul.mubr.msk.f32.vlgmr.msra.gmra.mrb[12].mxu0 %vm1012_vm2, %v1706_v10  ;;  %6178 = vmatprep.subr.mxu1 %v6570_v19 }
 0x405   :  { %6377 = vmatpush3.bf16.msra.mxu0 %v6374_v16 }
 0x406   :  { %6171 = vmatmul.mubr.msk.f32.vlgmr.msra.gmra.mrb[14].mxu1 %vm1012_vm2, %v1700_v2 }
 0x407   :  { %6179 = vmatpush3.msra.mxu1 %v1010_v7  ;;  %6180 = vmatprep.mubr.msk.f32.mxu1 %vm6571_vm1, %v6570_v19 }
 0x408   :  { %6188 = vmatprep.subr.mxu1 %v6570_v19 }
 0x41e   :  { %v1686_v18 = vpop.xlane.xlu1 %1685 }
 0x41f   :  { %6488 = vrcp.f32 %v1686_v18 }
 0x420   :  { %6490 = vrcp.f32 %v1692_v39 }
 0x429   :  { %v6489_v54 = vpop.eup %6488 }
 0x42a   :  { %v1704_v25 = vmul.f32 %v6489_v54, %v6926_v20  ;;  %v6491_v8 = vpop.eup %6490 }
 0x42b   :  { %v1708_v35 = vmul.f32 %v6491_v8, %v6901_v53 }
 0x42c   :  { %6181 = vmatmul.mubr.msk.f32.vlgmr.msra.gmra.mrb[16].mxu1 %vm1012_vm2, %v1704_v25 }
 0x42d   :  { %6189 = vmatpush3.msra.mxu1 %v1011_v9  ;;  %6190 = vmatprep.mubr.msk.f32.mxu1 %vm6571_vm1, %v6570_v19 }
 0x430   :  { %6191 = vmatmul.mubr.msk.f32.vlgmr.msra.gmra.mrb[18].mxu1 %vm1012_vm2, %v1708_v35 }
 0x4c6   :  { %v1778_v45 = vpop.f32.mrb[6].mxu0 }
 0x4c7   :  { %v6157_v55 = vpop.f32.mrb[7].mxu0 }
 0x4ca   :  { %v1924_v21 = vpop.f32.mrb[8].mxu0 }
 0x4cb   :  { %v6167_v22 = vpop.f32.mrb[9].mxu0 }
 0x4cf   :  { %v2070_v51 = vpop.f32.mrb[10].mxu0 }
 0x4d0   :  { %v2293_v17 = vcombine.low %v1778_v45, %v2070_v51  ;;  %v2294_v23 = vcombine.high %v1778_v45, %v2070_v51  ;;  %v6177_v20 = vpop.f32.mrb[11].mxu0 }
 0x4d2   :  { %v2301_v38 = vrot.slane %v2293_v17, %v6668_v27  ;;  %v2308_v53 = vrot.slane %v2294_v23, %v6668_v27 }
 0x4d5   :  { %v1851_v24 = vpop.f32.mrb[12].mxu1 }
 0x4d6   :  { %v6162_v26 = vpop.f32.mrb[13].mxu1 }
 0x4d7   :  { %v2216_v28 = vpop.f32.mrb[12].mxu0 }
 0x4d8   :  { %v2309_v29 = vcombine.low %v1924_v21, %v2216_v28  ;;  %v2310_v30 = vcombine.high %v1924_v21, %v2216_v28  ;;  %v6187_v31 = vpop.f32.mrb[13].mxu0  ;;  %v20_v28 = vld [vmem:[%s7662_s1 + $0x30] sm:$0xff] }
 0x4d9   :  { %v1997_v34 = vpop.f32.mrb[14].mxu1 }
 0x4da   :  { %v2317_v40 = vrot.slane %v2309_v29, %v6668_v27  ;;  %v2324_v41 = vrot.slane %v2310_v30, %v6668_v27  ;;  %v6172_v42 = vpop.f32.mrb[15].mxu1  ;;  %v21_v29 = vld [vmem:[%s7662_s1 + $0x38] sm:$0xff] }
 0x4db   :  { %v6378_v30 = vpack.c.bf16 %v21_v29, %v20_v28  ;;  %v26_v29 = vld [vmem:[%s7662_s1 + $0x60] sm:$0xff] }
 0x4dc   :  { %v2325_v43 = vcombine.low %v2301_v38, %v2317_v40  ;;  %v2326_v44 = vcombine.high %v2301_v38, %v2317_v40  ;;  %v2341_v47 = vcombine.low %v2308_v53, %v2324_v41  ;;  %v2342_v48 = vcombine.high %v2308_v53, %v2324_v41 }
 0x4dd   :  { %6379 = vmatprep.subr.bf16.mxu0 %v6378_v30 }
 0x4de   :  { %v2333_v49 = vrot.slane %v2325_v43, %v6681_v36  ;;  %v2340_v5 = vrot.slane %v2326_v44, %v6681_v36  ;;  %v2349_v52 = vrot.slane %v2341_v47, %v6681_v36  ;;  %v2356_v50 = vrot.slane %v2342_v48, %v6681_v36  ;;  %6381 = vmatpush3.bf16.msra.mxu0 %v6378_v30  ;;  %v27_v30 = vld [vmem:[%s7662_s1 + $0x68] sm:$0xff] }
 0x4e0   :  { %v2429_v56 = vcombine.low %v2333_v49, %v2340_v5  ;;  %v5909_v57 = vcombine.high %v2333_v49, %v2340_v5  ;;  %v2445_v58 = vcombine.low %v2349_v52, %v2356_v50  ;;  %v5910_v59 = vcombine.high %v2349_v52, %v2356_v50 }
 0x4e2   :  { %v2436_v60 = vrot.slane %v2429_v56, %v6668_v27  ;;  %v2444_v61 = vrot.slane %v5909_v57, %v6668_v27  ;;  %v2452_v15 = vrot.slane %v2445_v58, %v6668_v27  ;;  %v2460_v62 = vrot.slane %v5910_v59, %v6668_v27 }
 0x4e4   :  { %v2461_v63 = vcombine.low %v2436_v60, %v2444_v61  ;;  %v2477_v0 = vcombine.low %v2452_v15, %v2460_v62  ;;  %v2462_v14 = vcombine.high %v2436_v60, %v2444_v61  ;;  %v2478_v1 = vcombine.high %v2452_v15, %v2460_v62 }
 0x4e6   :  { %v7001_v13 = vrot.slane %v2461_v63, %v6681_v36  ;;  %v7004_v3 = vrot.slane %v2477_v0, %v6681_v36  ;;  %v2476_v46 = vrot.slane %v2462_v14, %v6681_v36  ;;  %v2492_v4 = vrot.slane %v2478_v1, %v6681_v36 }
 0x4e8   :  { %v2494_v32 = vcombine.high %v7001_v13, %v7004_v3  ;;  %v2495_v11 = vcombine.low %v2476_v46, %v2492_v4  ;;  %v2496_v33 = vcombine.high %v2476_v46, %v2492_v4  ;;  %v2493_v37 = vcombine.low %v7001_v13, %v7004_v3  ;;  %v5913_v13 = vld [vmem:[%s7662_s1 + $0xa1] ss:$0 sm:$0xff] }
 0x4ea   :  { %2567 = vrot.lane.b32.xlu0 %v2494_v32, %s6575_s4 }
 0x4ee   :  { %2575 = vrot.lane.b32.xlu0 %v2495_v11, %s6576_s5 }
 0x4ff   :  { %v2143_v10 = vpop.f32.mrb[16].mxu1 }
 0x500   :  { %v2361_v2 = vcombine.low %v1851_v24, %v2143_v10  ;;  %v2362_v7 = vcombine.high %v1851_v24, %v2143_v10  ;;  %v6182_v39 = vpop.f32.mrb[17].mxu1 }
 0x502   :  { %v2369_v9 = vrot.slane %v2361_v2, %v6668_v27  ;;  %v2376_v35 = vrot.slane %v2362_v7, %v6668_v27  ;;  %v6541_v2 = vld [vmem:[%s7661_s0] sm:$0xff] }
 0x503   :  { %v2289_v18 = vpop.f32.mrb[18].mxu1 }
 0x504   :  { %v2377_v54 = vcombine.low %v1997_v34, %v2289_v18  ;;  %v2378_v25 = vcombine.high %v1997_v34, %v2289_v18  ;;  %v6192_v8 = vpop.f32.mrb[19].mxu1 }
 0x506   :  { %v2385_v45 = vrot.slane %v2377_v54, %v6668_v27  ;;  %v2392_v55 = vrot.slane %v2378_v25, %v6668_v27 }
 0x508   :  { %v2393_v21 = vcombine.low %v2369_v9, %v2385_v45  ;;  %v2394_v22 = vcombine.high %v2369_v9, %v2385_v45  ;;  %v2409_v51 = vcombine.low %v2376_v35, %v2392_v55  ;;  %v2410_v17 = vcombine.high %v2376_v35, %v2392_v55 }
 0x50a   :  { %v2401_v23 = vrot.slane %v2393_v21, %v6681_v36  ;;  %v2408_v20 = vrot.slane %v2394_v22, %v6681_v36  ;;  %v2417_v24 = vrot.slane %v2409_v51, %v6681_v36  ;;  %v2424_v26 = vrot.slane %v2410_v17, %v6681_v36  ;;  %v22_v17 = vld [vmem:[%s7662_s1 + $0x40] sm:$0xff] }
 0x50c   :  { %v2497_v31 = vcombine.low %v2401_v23, %v2408_v20  ;;  %v5911_v34 = vcombine.high %v2401_v23, %v2408_v20  ;;  %v2513_v38 = vcombine.low %v2417_v24, %v2424_v26  ;;  %v5912_v53 = vcombine.high %v2417_v24, %v2424_v26  ;;  %v23_v23 = vld [vmem:[%s7662_s1 + $0x48] sm:$0xff]  ;;  %v24_v24 = vld [vmem:[%s7662_s1 + $0x50] sm:$0xff]  ;;  %v25_v26 = vld [vmem:[%s7662_s1 + $0x58] sm:$0xff] }
 0x50d   :  { %v6382_v20 = vpack.c.bf16 %v23_v23, %v22_v17  ;;  %v6386_v28 = vpack.c.bf16 %v25_v26, %v24_v24  ;;  %v2937_v17 = vld [vmem:[%s7662_s1 + $0xb0] sm:$0xff]  ;;  %v2938_v23 = vld [vmem:[%s7662_s1 + $0xb8] sm:$0xff]  ;;  %v2939_v24 = vld [vmem:[%s7662_s1 + $0xc0] sm:$0xff] }
 0x50e   :  { %v2504_v40 = vrot.slane %v2497_v31, %v6668_v27  ;;  %v2512_v41 = vrot.slane %v5911_v34, %v6668_v27  ;;  %v2520_v42 = vrot.slane %v2513_v38, %v6668_v27  ;;  %v2528_v43 = vrot.slane %v5912_v53, %v6668_v27  ;;  %v28_v31 = vld [vmem:[%s7662_s1 + $0x70] sm:$0xff]  ;;  %v29_v38 = vld [vmem:[%s7662_s1 + $0x78] sm:$0xff] }
 0x50f   :  { %6383 = vmatprep.subr.bf16.mxu1 %v6382_v20  ;;  %v6390_v34 = vpack.c.bf16 %v27_v30, %v26_v29  ;;  %v6394_v53 = vpack.c.bf16 %v29_v38, %v28_v31  ;;  %v6410_v26 = vpack.c.bf16 %v2939_v24, %v2938_v23 }
 0x510   :  { %v2530_v44 = vcombine.high %v2504_v40, %v2512_v41  ;;  %v2546_v47 = vcombine.high %v2520_v42, %v2528_v43  ;;  %v2529_v48 = vcombine.low %v2504_v40, %v2512_v41  ;;  %v2545_v49 = vcombine.low %v2520_v42, %v2528_v43  ;;  %6385 = vmatpush3.bf16.msra.mxu1 %v6382_v20  ;;  %v30_v40 = vld [vmem:[%s7662_s1 + $0x80] sm:$0xff]  ;;  %v31_v41 = vld [vmem:[%s7662_s1 + $0x88] sm:$0xff] }
 0x511   :  { %6387 = vmatprep.subr.bf16.mxu1 %v6386_v28  ;;  %6391 = vmatprep.subr.bf16.mxu0 %v6390_v34  ;;  %v6398_v42 = vpack.c.bf16 %v31_v41, %v30_v40  ;;  %v5924_v40 = vld [vmem:[%s7662_s1 + $0xa4] ss:$0 sm:$0xff] }
 0x512   :  { %v2544_v5 = vrot.slane %v2530_v44, %v6681_v36  ;;  %v2560_v52 = vrot.slane %v2546_v47, %v6681_v36  ;;  %v2537_v50 = vrot.slane %v2529_v48, %v6681_v36  ;;  %v2553_v56 = vrot.slane %v2545_v49, %v6681_v36 }
 0x514   :  { %v2563_v57 = vcombine.low %v2544_v5, %v2560_v52  ;;  %v2562_v58 = vcombine.high %v2537_v50, %v2553_v56  ;;  %v2564_v59 = vcombine.high %v2544_v5, %v2560_v52  ;;  %v2561_v12 = vcombine.low %v2537_v50, %v2553_v56  ;;  %6389 = vmatpush3.bf16.msra.mxu1 %v6386_v28  ;;  %v5916_v50 = vld [vmem:[%s7662_s1 + $0xa2] ss:$0 sm:$0xff] }
 0x516   :  { %2577 = vrot.lane.b32.xlu0 %v2563_v57, %s6576_s5  ;;  %2569 = vrot.lane.b32.xlu1 %v2562_v58, %s6575_s4  ;;  %v5917_v57 = vld [vmem:[%s7662_s1 + $0xa3] ss:$0 sm:$0xff] }
 0x51a   :  { %2583 = vrot.lane.b32.xlu0 %v2496_v33, %s6577_s10  ;;  %2585 = vrot.lane.b32.xlu1 %v2564_v59, %s6577_s10 }
 0x55c   :  { %v2568_v6 = vpop.permute.xlu0 %2567 }
 0x55d   :  { %v2589_v16 = vsel %vm1012_vm2, %v2493_v37, %v2568_v6  ;;  %v6540_v37 = vld [vmem:[%s7661_s0 + $0x8] sm:$0xff] }
 0x560   :  { %v2576_v60 = vpop.permute.xlu0 %2575 }
 0x561   :  { %v2592_v63 = vsel %vm2591_vm3, %v2589_v16, %v2576_v60 }
 0x588   :  { %v2570_v61 = vpop.permute.xlu1 %2569  ;;  %v2578_v15 = vpop.permute.xlu0 %2577 }
 0x589   :  { %v2590_v62 = vsel %vm1012_vm2, %v2561_v12, %v2570_v61 }
 0x58a   :  { %v2593_v0 = vsel %vm2591_vm3, %v2590_v62, %v2578_v15  ;;  %v32_v15 = vld [vmem:[%s7662_s1 + $0x90] sm:$0xff]  ;;  %v33_v62 = vld [vmem:[%s7662_s1 + $0x98] sm:$0xff] }
 0x58b   :  { %v6402_v16 = vpack.c.bf16 %v33_v62, %v32_v15 }
 0x58c   :  { %v2586_v14 = vpop.permute.xlu1 %2585  ;;  %v2584_v1 = vpop.permute.xlu0 %2583 }
 0x58d   :  { %v2596_v46 = vsel %vm2594_vm4, %v2593_v0, %v2586_v14  ;;  %v2595_v4 = vsel %vm2594_vm4, %v2592_v63, %v2584_v1  ;;  %v5918_v63 = vld [vmem:[%s7662_s1 + $0xa6] ss:$0 sm:$0xff] }
 0x58e   :  { %6201 = vmatprep.mubr.msk.f32.mxu0 %vm46_vm0, %v2595_v4 }
 0x58f   :  { %6202 = vmatmul.mubr.msk.f32.vlgmr.msra.gmra.mrb[14].mxu0 %vm46_vm0, %v2596_v46 }
 0x590   :  { %6393 = vmatpush3.bf16.msra.mxu0 %v6390_v34 }
 0x591   :  { %6395 = vmatprep.subr.bf16.mxu0 %v6394_v53 }
 0x594   :  { %6397 = vmatpush3.bf16.msra.mxu0 %v6394_v53 }
 0x595   :  { %6399 = vmatprep.subr.bf16.mxu0 %v6398_v42 }
 0x598   :  { %6401 = vmatpush3.bf16.msra.mxu0 %v6398_v42 }
 0x599   :  { %6403 = vmatprep.subr.bf16.mxu0 %v6402_v16 }
 0x59c   :  { %6405 = vmatpush3.bf16.msra.mxu0 %v6402_v16 }
 0x59d   :  { %6255 = vmatprep.subr.mxu0 %v6570_v19 }
 0x662   :  { %v6203_v3 = vpop.f32.mrb[14].mxu0 }
 0x663   :  { %v2679_v32 = vadd.f32 %v6203_v3, %v5913_v13  ;;  %v2673_v11 = vpop.f32.mrb[15].mxu0  ;;  %v5921_v3 = vld [vmem:[%s7662_s1 + $0xa7] ss:$0 sm:$0xff] }
 0x664   :  { %v2674_v33 = vadd.f32 %v5913_v13, %v2673_v11 }
 0x665   :  { %v2683_v10 = vadd.f32 %v6540_v37, %v2679_v32 }
 0x666   :  { %v2682_v7 = vadd.f32 %v6541_v2, %v2674_v33 }
 0x667   :  { %v2687_v39 = vsel %vm46_vm0, %v2683_v10, 0.0 }
 0x668   :  { %2688 = vadd.xlane.f32.xlu1 %v2687_v39  ;;  %v2684_v18 = vsel %vm46_vm0, %v2682_v7, 0.0 }
 0x669   :  { %2685 = vadd.xlane.f32.xlu0 %v2684_v18 }
 0x6f5   :  { %v2689_v54 = vpop.xlane.xlu1 %2688 }
 0x6f6   :  { %v2692_v25 = vmul.f32 0.03125, %v2689_v54  ;;  %v2686_v8 = vpop.xlane.xlu0 %2685 }
 0x6f7   :  { %v2691_v9 = vmul.f32 0.03125, %v2686_v8 }
 0x6f8   :  { %v2694_v35 = vsub.f32 %v2683_v10, %v2692_v25 }
 0x6f9   :  { %v2693_v45 = vsub.f32 %v2682_v7, %v2691_v9 }
 0x6fa   :  { %v2696_v22 = vmul.f32 %v2694_v35, %v2694_v35 }
 0x6fb   :  { %v2695_v55 = vmul.f32 %v2693_v45, %v2693_v45 }
 0x6fc   :  { %v2700_v51 = vsel %vm46_vm0, %v2696_v22, 0.0 }
 0x6fd   :  { %v2697_v21 = vsel %vm46_vm0, %v2695_v55, 0.0 }
 0x6fe   :  { %2698 = vadd.xlane.f32.xlu0 %v2697_v21 }
 0x702   :  { %2701 = vadd.xlane.f32.xlu0 %v2700_v51  ;;  %v2936_v51 = vld [vmem:[%s7662_s1 + $0xa8] sm:$0xff] }
 0x703   :  { %v6406_v20 = vpack.c.bf16 %v2937_v17, %v2936_v51 }
 0x705   :  { %6407 = vmatprep.subr.bf16.mxu1 %v6406_v20 }
 0x78b   :  { %v2699_v43 = vpop.xlane.xlu0 %2698 }
 0x78c   :  { %v2703_v44 = vmul.f32 0.03125, %v2699_v43 }
 0x78e   :  { %v2705_v47 = vadd.f32 1e-05, %v2703_v44  ;;  %v5925_v44 = vld [vmem:[%s7662_s1 + $0xa5] ss:$0 sm:$0xff] }
 0x78f   :  { %v2702_v48 = vpop.xlane.xlu0 %2701 }
 0x790   :  { %6492 = vrsqrt.f32 %v2705_v47  ;;  %v2704_v49 = vmul.f32 0.03125, %v2702_v48 }
 0x792   :  { %v2706_v5 = vadd.f32 1e-05, %v2704_v49 }
 0x794   :  { %6494 = vrsqrt.f32 %v2706_v5 }
 0x79a   :  { %v6493_v52 = vpop.eup %6492 }
 0x79b   :  { %v2709_v56 = vmul.f32 %v6493_v52, %v2693_v45  ;;  %v5926_v52 = vld [vmem:[%s7662_s1 + $0x148] ss:$0 sm:$0xff] }
 0x79d   :  { %v2715_v58 = vmul.f32 %v5916_v50, %v2709_v56 }
 0x79e   :  { %v6495_v59 = vpop.eup %6494 }
 0x79f   :  { %v2710_v12 = vmul.f32 %v6495_v59, %v2694_v35  ;;  %v2721_v6 = vadd.f32 %v5917_v57, %v2715_v58 }
 0x7a1   :  { %v2716_v60 = vmul.f32 %v5916_v50, %v2710_v12  ;;  %6212 = vmatprep.mubr.msk.f32.mxu1 %vm46_vm0, %v2721_v6 }
 0x7a3   :  { %v2722_v61 = vadd.f32 %v5917_v57, %v2716_v60 }
 0x7a5   :  { %6213 = vmatmul.mubr.msk.f32.vlgmr.msra.gmra.mrb[20].mxu1 %vm46_vm0, %v2722_v61 }
 0x7a6   :  { %6409 = vmatpush3.bf16.msra.mxu1 %v6406_v20 }
 0x7a7   :  { %6411 = vmatprep.subr.bf16.mxu1 %v6410_v26 }
 0x7aa   :  { %6413 = vmatpush3.bf16.msra.mxu1 %v6410_v26 }
 0x7ab   :  { %6245 = vmatprep.subr.mxu1 %v6570_v19 }
 0x878   :  { %v6214_v0 = vpop.f32.mrb[20].mxu1 }
 0x879   :  { %v2805_v14 = vadd.f32 %v6214_v0, %v5918_v63  ;;  %v2799_v1 = vpop.f32.mrb[21].mxu1 }
 0x87a   :  { %v2800_v46 = vadd.f32 %v5918_v63, %v2799_v1 }
 0x87b   :  { %v2809_v13 = vmax.f32 %v2805_v14, 0.0 }
 0x87c   :  { %v2808_v4 = vmax.f32 %v2800_v46, 0.0 }
 0x87e   :  { %6231 = vmatprep.mubr.msk.f32.mxu0 %vm2814_vm5, %v2808_v4 }
 0x87f   :  { %6232 = vmatmul.mubr.msk.f32.vlgmr.msra.gmra.mrb[16].mxu0 %vm2814_vm5, %v2809_v13 }
 0x880   :  { %6257 = vmatprep.mubr.msk.f32.mxu0 %vm6571_vm1, %v6570_v19 }
 0x952   :  { %v6233_v32 = vpop.f32.mrb[16].mxu0 }
 0x953   :  { %v2893_v11 = vadd.f32 %v6233_v32, %v5921_v3  ;;  %v2887_v33 = vpop.f32.mrb[17].mxu0 }
 0x954   :  { %v2888_v37 = vadd.f32 %v5921_v3, %v2887_v33 }
 0x955   :  { %v2897_v10 = vadd.f32 %v2893_v11, %v2722_v61 }
 0x956   :  { %v2896_v2 = vadd.f32 %v2888_v37, %v2721_v6 }
 0x957   :  { %v2901_v7 = vsel %vm46_vm0, %v2897_v10, 0.0 }
 0x958   :  { %2902 = vadd.xlane.f32.xlu0 %v2901_v7  ;;  %v2898_v39 = vsel %vm46_vm0, %v2896_v2, 0.0 }
 0x959   :  { %2899 = vadd.xlane.f32.xlu1 %v2898_v39 }
 0x9e5   :  { %v2903_v18 = vpop.xlane.xlu0 %2902 }
 0x9e6   :  { %v2905_v54 = vmul.f32 0.03125, %v2903_v18  ;;  %v2900_v25 = vpop.xlane.xlu1 %2899 }
 0x9e7   :  { %v2904_v8 = vmul.f32 0.03125, %v2900_v25 }
 0x9e8   :  { %v2907_v9 = vsub.f32 %v2897_v10, %v2905_v54 }
 0x9e9   :  { %v2906_v35 = vsub.f32 %v2896_v2, %v2904_v8 }
 0x9ea   :  { %v2909_v45 = vmul.f32 %v2907_v9, %v2907_v9 }
 0x9eb   :  { %v2908_v55 = vmul.f32 %v2906_v35, %v2906_v35 }
 0x9ec   :  { %v2913_v21 = vsel %vm46_vm0, %v2909_v45, 0.0 }
 0x9ed   :  { %2914 = vadd.xlane.f32.xlu0 %v2913_v21  ;;  %v2910_v22 = vsel %vm46_vm0, %v2908_v55, 0.0 }
 0x9ee   :  { %2911 = vadd.xlane.f32.xlu1 %v2910_v22 }
 0xa7a   :  { %v2915_v28 = vpop.xlane.xlu0 %2914 }
 0xa7b   :  { %v2917_v29 = vmul.f32 0.03125, %v2915_v28  ;;  %v2912_v30 = vpop.xlane.xlu1 %2911 }
 0xa7c   :  { %v2916_v31 = vmul.f32 0.03125, %v2912_v30 }
 0xa7d   :  { %v2919_v34 = vadd.f32 1e-05, %v2917_v29 }
 0xa7e   :  { %v2918_v38 = vadd.f32 1e-05, %v2916_v31 }
 0xa7f   :  { %6496 = vrsqrt.f32 %v2919_v34 }
 0xa80   :  { %6498 = vrsqrt.f32 %v2918_v38 }
 0xa89   :  { %v6497_v53 = vpop.eup %6496 }
 0xa8a   :  { %v6499_v41 = vpop.eup %6498  ;;  %v2923_v42 = vmul.f32 %v6497_v53, %v2907_v9 }
 0xa8b   :  { %v2922_v43 = vmul.f32 %v6499_v41, %v2906_v35 }
 0xa8c   :  { %v2929_v47 = vmul.f32 %v5924_v40, %v2923_v42 }
 0xa8d   :  { %v2928_v48 = vmul.f32 %v5924_v40, %v2922_v43 }
 0xa8e   :  { %v7144_v5 = vadd.f32 %v5925_v44, %v2929_v47 }
 0xa8f   :  { %v7142_v49 = vadd.f32 %v5925_v44, %v2928_v48 }
 0xa91   :  { %6242 = vmatprep.mubr.msk.f32.mxu1 %vm46_vm0, %v7142_v49 }
 0xa92   :  { %6243 = vmatmul.mubr.msk.f32.vlgmr.msra.gmra.mrb[22].mxu1 %vm46_vm0, %v7144_v5 }
 0xa93   :  { %6247 = vmatprep.mubr.msk.f32.mxu1 %vm6571_vm1, %v6570_v19 }
 0xb65   :  { %v6244_v50 = vpop.f32.mrb[22].mxu1 }
 0xb66   :  { %v7155_v56 = vadd.f32 %v6244_v50, %v5926_v52  ;;  %v3040_v57 = vpop.f32.mrb[23].mxu1 }
 0xb67   :  { %v7157_v58 = vadd.f32 %v5926_v52, %v3040_v57 }
 0xb68   :  { %3053 = vrot.lane.b32.xlu1 %v7155_v56, %s6566_s23 }
 0xb69   :  { %3057 = vrot.lane.b32.xlu0 %v7157_v58, %s6568_s25 }
 0xb6c   :  { %3051 = vrot.lane.b32.xlu1 %v7157_v58, %s6566_s23 }
 0xb6d   :  { %3059 = vrot.lane.b32.xlu0 %v7155_v56, %s6568_s25 }
 0xb70   :  { %3063 = vrot.lane.b32.xlu1 %v7157_v58, %s6567_s24 }
 0xb71   :  { %3343 = vrot.lane.b32.xlu0 %v7155_v56, %s6569_s26 }
 0xb74   :  { %3065 = vrot.lane.b32.xlu1 %v7155_v56, %s6567_s24 }
 0xb75   :  { %3341 = vrot.lane.b32.xlu0 %v7157_v58, %s6569_s26 }
 0xbda   :  { %v7175_v59 = vpop.permute.xlu1 %3053 }
 0xbdb   :  { %v7177_v12 = vpop.permute.xlu0 %3057  ;;  %3347 = vrot.lane.b32.xlu1 %v7175_v59, %s6569_s26 }
 0xbdc   :  { %3349 = vrot.lane.b32.xlu0 %v7177_v12, %s6569_s26  ;;  %v3069_v63 = vcombine.low %v7157_v58, %v7177_v12  ;;  %v3070_v0 = vcombine.high %v7157_v58, %v7177_v12 }
 0xbde   :  { %v7183_v6 = vpop.permute.xlu1 %3051  ;;  %v3077_v46 = vrot.slane %v3069_v63, %v6668_v27  ;;  %v3084_v4 = vrot.slane %v3070_v0, %v6668_v27 }
 0xbdf   :  { %v7185_v60 = vpop.permute.xlu0 %3059  ;;  %3345 = vrot.lane.b32.xlu1 %v7183_v6, %s6569_s26 }
 0xbe0   :  { %3351 = vrot.lane.b32.xlu0 %v7185_v60, %s6569_s26  ;;  %v3137_v37 = vcombine.low %v7155_v56, %v7185_v60  ;;  %v3138_v25 = vcombine.high %v7155_v56, %v7185_v60 }
 0xbe2   :  { %v7191_v61 = vpop.permute.xlu1 %3063  ;;  %v3145_v9 = vrot.slane %v3137_v37, %v6668_v27  ;;  %v3152_v51 = vrot.slane %v3138_v25, %v6668_v27 }
 0xbe3   :  { %3353 = vrot.lane.b32.xlu1 %v7191_v61, %s6569_s26  ;;  %v3085_v62 = vcombine.low %v7183_v6, %v7191_v61  ;;  %v3086_v16 = vcombine.high %v7183_v6, %v7191_v61  ;;  %v7215_v10 = vpop.permute.xlu0 %3343 }
 0xbe5   :  { %v3093_v14 = vrot.slane %v3085_v62, %v6668_v27  ;;  %v3100_v1 = vrot.slane %v3086_v16, %v6668_v27 }
 0xbe6   :  { %v7195_v15 = vpop.permute.xlu1 %3065 }
 0xbe7   :  { %3355 = vrot.lane.b32.xlu1 %v7195_v15, %s6569_s26  ;;  %v3101_v13 = vcombine.low %v3077_v46, %v3093_v14  ;;  %v3102_v3 = vcombine.high %v3077_v46, %v3093_v14  ;;  %v3117_v32 = vcombine.low %v3084_v4, %v3100_v1  ;;  %v3118_v11 = vcombine.high %v3084_v4, %v3100_v1  ;;  %v3342_v17 = vpop.permute.xlu0 %3341 }
 0xbe8   :  { %v3153_v33 = vcombine.low %v7175_v59, %v7195_v15  ;;  %v3154_v2 = vcombine.high %v7175_v59, %v7195_v15 }
 0xbe9   :  { %v3109_v7 = vrot.slane %v3101_v13, %v6681_v36  ;;  %v3116_v39 = vrot.slane %v3102_v3, %v6681_v36  ;;  %v3125_v18 = vrot.slane %v3117_v32, %v6681_v36  ;;  %v3132_v54 = vrot.slane %v3118_v11, %v6681_v36 }
 0xbea   :  { %v3161_v8 = vrot.slane %v3153_v33, %v6668_v27  ;;  %v3168_v35 = vrot.slane %v3154_v2, %v6668_v27 }
 0xbeb   :  { %v3205_v45 = vcombine.low %v3109_v7, %v3116_v39  ;;  %v5929_v55 = vcombine.high %v3109_v7, %v3116_v39  ;;  %v3221_v21 = vcombine.low %v3125_v18, %v3132_v54  ;;  %v5930_v22 = vcombine.high %v3125_v18, %v3132_v54 }
 0xbec   :  { %v3169_v23 = vcombine.low %v3145_v9, %v3161_v8  ;;  %v3170_v20 = vcombine.high %v3145_v9, %v3161_v8  ;;  %v3185_v26 = vcombine.low %v3152_v51, %v3168_v35  ;;  %v3186_v28 = vcombine.high %v3152_v51, %v3168_v35 }
 0xbed   :  { %v7230_v29 = vrot.slane %v3205_v45, %v6668_v27  ;;  %v7233_v30 = vrot.slane %v5929_v55, %v6668_v27  ;;  %v7236_v31 = vrot.slane %v3221_v21, %v6668_v27  ;;  %v7239_v34 = vrot.slane %v5930_v22, %v6668_v27 }
 0xbee   :  { %v3177_v53 = vrot.slane %v3169_v23, %v6681_v36  ;;  %v3184_v40 = vrot.slane %v3170_v20, %v6681_v36  ;;  %v3193_v42 = vrot.slane %v3185_v26, %v6681_v36  ;;  %v3200_v43 = vrot.slane %v3186_v28, %v6681_v36 }
 0xbef   :  { %v3237_v44 = vcombine.low %v7230_v29, %v7233_v30  ;;  %v3253_v47 = vcombine.low %v7236_v31, %v7239_v34  ;;  %v3238_v14 = vcombine.high %v7230_v29, %v7233_v30  ;;  %v3254_v1 = vcombine.high %v7236_v31, %v7239_v34 }
 0xbf0   :  { %v3273_v50 = vcombine.low %v3177_v53, %v3184_v40  ;;  %v5931_v57 = vcombine.high %v3177_v53, %v3184_v40  ;;  %v3289_v46 = vcombine.low %v3193_v42, %v3200_v43  ;;  %v5932_v4 = vcombine.high %v3193_v42, %v3200_v43 }
 0xbf1   :  { %v7254_v13 = vrot.slane %v3237_v44, %v6681_v36  ;;  %v7257_v3 = vrot.slane %v3253_v47, %v6681_v36 }
 0xbf2   :  { %v7264_v2 = vrot.slane %v3273_v50, %v6668_v27  ;;  %v7267_v7 = vrot.slane %v5931_v57, %v6668_v27  ;;  %v7272_v45 = vrot.slane %v3289_v46, %v6668_v27  ;;  %v7275_v55 = vrot.slane %v5932_v4, %v6668_v27 }
 0xc4d   :  { %v3348_v24 = vpop.permute.xlu1 %3347 }
 0xc4e   :  { %v3350_v38 = vpop.permute.xlu0 %3349 }
 0xc4f   :  { %v3365_v48 = vcombine.low %v3342_v17, %v3350_v38  ;;  %v3366_v52 = vcombine.high %v3342_v17, %v3350_v38 }
 0xc51   :  { %v3346_v41 = vpop.permute.xlu1 %3345  ;;  %v3373_v32 = vrot.slane %v3365_v48, %v6668_v27  ;;  %v3380_v11 = vrot.slane %v3366_v52, %v6668_v27 }
 0xc52   :  { %v3352_v16 = vpop.permute.xlu0 %3351 }
 0xc53   :  { %v3433_v39 = vcombine.low %v7215_v10, %v3352_v16  ;;  %v3434_v18 = vcombine.high %v7215_v10, %v3352_v16 }
 0xc55   :  { %v3354_v62 = vpop.permute.xlu1 %3353  ;;  %v3441_v20 = vrot.slane %v3433_v39, %v6668_v27  ;;  %v3448_v26 = vrot.slane %v3434_v18, %v6668_v27 }
 0xc56   :  { %v3381_v63 = vcombine.low %v3346_v41, %v3354_v62  ;;  %v3382_v0 = vcombine.high %v3346_v41, %v3354_v62 }
 0xc58   :  { %v3389_v33 = vrot.slane %v3381_v63, %v6668_v27  ;;  %v3396_v37 = vrot.slane %v3382_v0, %v6668_v27 }
 0xc59   :  { %v3356_v54 = vpop.permute.xlu1 %3355 }
 0xc5a   :  { %v3397_v25 = vcombine.low %v3373_v32, %v3389_v33  ;;  %v3398_v8 = vcombine.high %v3373_v32, %v3389_v33  ;;  %v3413_v9 = vcombine.low %v3380_v11, %v3396_v37  ;;  %v3414_v35 = vcombine.high %v3380_v11, %v3396_v37 }
 0xc5b   :  { %v3449_v21 = vcombine.low %v3348_v24, %v3356_v54  ;;  %v3450_v22 = vcombine.high %v3348_v24, %v3356_v54 }
 0xc5c   :  { %v3405_v51 = vrot.slane %v3397_v25, %v6681_v36  ;;  %v3412_v17 = vrot.slane %v3398_v8, %v6681_v36  ;;  %v3421_v23 = vrot.slane %v3413_v9, %v6681_v36  ;;  %v3428_v10 = vrot.slane %v3414_v35, %v6681_v36 }
 0xc5d   :  { %v3457_v28 = vrot.slane %v3449_v21, %v6668_v27  ;;  %v3464_v38 = vrot.slane %v3450_v22, %v6668_v27  ;;  %v3305_v8 = vcombine.low %v7264_v2, %v7267_v7  ;;  %v3321_v9 = vcombine.low %v7272_v45, %v7275_v55 }
 0xc5e   :  { %v3501_v53 = vcombine.low %v3405_v51, %v3412_v17  ;;  %v5933_v40 = vcombine.high %v3405_v51, %v3412_v17  ;;  %v3517_v41 = vcombine.low %v3421_v23, %v3428_v10  ;;  %v5934_v24 = vcombine.high %v3421_v23, %v3428_v10 }
 0xc5f   :  { %v3465_v42 = vcombine.low %v3441_v20, %v3457_v28  ;;  %v3466_v43 = vcombine.high %v3441_v20, %v3457_v28  ;;  %v3481_v44 = vcombine.low %v3448_v26, %v3464_v38  ;;  %v3482_v47 = vcombine.high %v3448_v26, %v3464_v38 }
 0xc60   :  { %v3508_v48 = vrot.slane %v3501_v53, %v6668_v27  ;;  %v3516_v52 = vrot.slane %v5933_v40, %v6668_v27  ;;  %v3524_v50 = vrot.slane %v3517_v41, %v6668_v27  ;;  %v3532_v57 = vrot.slane %v5934_v24, %v6668_v27 }
 0xc61   :  { %v3473_v62 = vrot.slane %v3465_v42, %v6681_v36  ;;  %v3480_v16 = vrot.slane %v3466_v43, %v6681_v36  ;;  %v3489_v63 = vrot.slane %v3481_v44, %v6681_v36  ;;  %v3496_v0 = vrot.slane %v3482_v47, %v6681_v36 }
 0xc62   :  { %v3533_v46 = vcombine.low %v3508_v48, %v3516_v52  ;;  %v3534_v4 = vcombine.high %v3508_v48, %v3516_v52  ;;  %v3549_v32 = vcombine.low %v3524_v50, %v3532_v57  ;;  %v3550_v11 = vcombine.high %v3524_v50, %v3532_v57 }
 0xc63   :  { %v3569_v33 = vcombine.low %v3473_v62, %v3480_v16  ;;  %v5935_v37 = vcombine.high %v3473_v62, %v3480_v16  ;;  %v3585_v39 = vcombine.low %v3489_v63, %v3496_v0  ;;  %v5936_v18 = vcombine.high %v3489_v63, %v3496_v0 }
 0xc64   :  { %v3541_v54 = vrot.slane %v3533_v46, %v6681_v36  ;;  %v3557_v25 = vrot.slane %v3549_v32, %v6681_v36  ;;  %v3548_v10 = vrot.slane %v3534_v4, %v6681_v36  ;;  %v3564_v20 = vrot.slane %v3550_v11, %v6681_v36 }
 0xc65   :  { %v3576_v35 = vrot.slane %v3569_v33, %v6668_v27  ;;  %v3584_v21 = vrot.slane %v5935_v37, %v6668_v27  ;;  %v3592_v22 = vrot.slane %v3585_v39, %v6668_v27  ;;  %v3600_v51 = vrot.slane %v5936_v18, %v6668_v27 }
 0xc66   :  { %v3565_v17 = vcombine.low %v3541_v54, %v3557_v25  ;;  %v3566_v23 = vcombine.high %v3541_v54, %v3557_v25  ;;  %v3269_v38 = vcombine.low %v7254_v13, %v7257_v3  ;;  %v3252_v53 = vrot.slane %v3238_v14, %v6681_v36 }
 0xc67   :  { %v3601_v26 = vcombine.low %v3576_v35, %v3584_v21  ;;  %v3617_v28 = vcombine.low %v3592_v22, %v3600_v51  ;;  %v3268_v40 = vrot.slane %v3254_v1, %v6681_v36  ;;  %v3270_v41 = vcombine.high %v7254_v13, %v7257_v3 }
 0xc68   :  { %6246 = vmatpush3.xpose.msk.msra.mxu1 %vm1012_vm2, %v3565_v17  ;;  %6256 = vmatpush3.xpose.msk.msra.mxu0 %vm1012_vm2, %v3566_v23  ;;  %v3567_v43 = vcombine.low %v3548_v10, %v3564_v20  ;;  %v3313_v29 = vrot.slane %v3305_v8, %v6681_v36  ;;  %v3329_v30 = vrot.slane %v3321_v9, %v6681_v36 }
 0xc69   :  { %6250 = vmatprep.subr.mxu1 %v6570_v19  ;;  %6265 = vmatprep.subr.mxu0 %v6570_v19  ;;  %v3609_v24 = vrot.slane %v3601_v26, %v6681_v36  ;;  %v3625_v42 = vrot.slane %v3617_v28, %v6681_v36  ;;  %v3602_v14 = vcombine.high %v3576_v35, %v3584_v21 }
 0xc6a   :  { %v3618_v44 = vcombine.high %v3592_v22, %v3600_v51  ;;  %v3271_v34 = vcombine.low %v3252_v53, %v3268_v40  ;;  %v3306_v1 = vcombine.high %v7264_v2, %v7267_v7  ;;  %v3337_v13 = vcombine.low %v3313_v29, %v3329_v30 }
 0xc6b   :  { %6248 = vmatmul.mubr.msk.f32.vlgmr.msra.gmra.mrb[24].mxu1 %vm1012_vm2, %v3269_v38  ;;  %6258 = vmatmul.mubr.msk.f32.vlgmr.msra.gmra.mrb[18].mxu0 %vm1012_vm2, %v3270_v41  ;;  %v3633_v31 = vcombine.low %v3609_v24, %v3625_v42  ;;  %v3568_v3 = vcombine.high %v3548_v10, %v3564_v20  ;;  %v3322_v47 = vcombine.high %v7272_v45, %v7275_v55 }
 0xc6c   :  { %6266 = vmatpush3.xpose.msk.msra.mxu0 %vm1012_vm2, %v3567_v43  ;;  %6252 = vmatprep.mubr.msk.f32.mxu1 %vm6571_vm1, %v6570_v19  ;;  %v3634_v48 = vcombine.high %v3609_v24, %v3625_v42  ;;  %v3616_v52 = vrot.slane %v3602_v14, %v6681_v36  ;;  %v3632_v50 = vrot.slane %v3618_v44, %v6681_v36 }
 0xc6d   :  { %6251 = vmatpush3.xpose.msk.msra.mxu1 %vm1012_vm2, %v3633_v31  ;;  %6267 = vmatprep.mubr.msk.f32.mxu0 %vm6571_vm1, %v6570_v19  ;;  %v3272_v2 = vcombine.high %v3252_v53, %v3268_v40  ;;  %v3338_v7 = vcombine.high %v3313_v29, %v3329_v30  ;;  %v3320_v45 = vrot.slane %v3306_v1, %v6681_v36 }
 0xc6e   :  { %6260 = vmatprep.subr.mxu1 %v6570_v19  ;;  %6275 = vmatprep.subr.mxu0 %v6570_v19  ;;  %v3336_v55 = vrot.slane %v3322_v47, %v6681_v36  ;;  %v3635_v57 = vcombine.low %v3616_v52, %v3632_v50  ;;  %v3636_v16 = vcombine.high %v3616_v52, %v3632_v50 }
 0xc6f   :  { %6268 = vmatmul.mubr.msk.f32.vlgmr.msra.gmra.mrb[20].mxu0 %vm1012_vm2, %v3271_v34 }
 0xc70   :  { %6253 = vmatmul.mubr.msk.f32.vlgmr.msra.gmra.mrb[26].mxu1 %vm1012_vm2, %v3337_v13  ;;  %6276 = vmatpush3.xpose.msk.msra.mxu0 %vm1012_vm2, %v3568_v3  ;;  %v3339_v62 = vcombine.low %v3320_v45, %v3336_v55  ;;  %v3340_v63 = vcombine.high %v3320_v45, %v3336_v55 }
 0xc71   :  { %6261 = vmatpush3.xpose.msk.msra.mxu1 %vm1012_vm2, %v3634_v48  ;;  %6262 = vmatprep.mubr.msk.f32.mxu1 %vm6571_vm1, %v6570_v19 }
 0xc72   :  { %6277 = vmatprep.mubr.msk.f32.mxu0 %vm6571_vm1, %v6570_v19  ;;  %6270 = vmatprep.subr.mxu1 %v6570_v19 }
 0xc73   :  { %6278 = vmatmul.mubr.msk.f32.vlgmr.msra.gmra.mrb[22].mxu0 %vm1012_vm2, %v3272_v2  ;;  %6285 = vmatprep.subr.mxu0 %v6570_v19 }
 0xc74   :  { %6263 = vmatmul.mubr.msk.f32.vlgmr.msra.gmra.mrb[28].mxu1 %vm1012_vm2, %v3338_v7  ;;  %6287 = vmatprep.mubr.msk.f32.mxu0 %vm6571_vm1, %v6570_v19 }
 0xc75   :  { %6271 = vmatpush3.xpose.msk.msra.mxu1 %vm1012_vm2, %v3635_v57  ;;  %6272 = vmatprep.mubr.msk.f32.mxu1 %vm6571_vm1, %v6570_v19 }
 0xc76   :  { %6280 = vmatprep.subr.mxu1 %v6570_v19 }
 0xc78   :  { %6273 = vmatmul.mubr.msk.f32.vlgmr.msra.gmra.mrb[30].mxu1 %vm1012_vm2, %v3339_v62 }
 0xc79   :  { %6281 = vmatpush3.xpose.msk.msra.mxu1 %vm1012_vm2, %v3636_v16  ;;  %6282 = vmatprep.mubr.msk.f32.mxu1 %vm6571_vm1, %v6570_v19 }
 0xc7a   :  { %6290 = vmatprep.subr.mxu1 %v6570_v19 }
 0xc7c   :  { %6283 = vmatmul.mubr.msk.f32.vlgmr.msra.gmra.mrb[32].mxu1 %vm1012_vm2, %v3340_v63 }
 0xc7d   :  { %6292 = vmatprep.mubr.msk.f32.mxu1 %vm6571_vm1, %v6570_v19 }
 0xd3e   :  { %v4005_v0 = vpop.f32.mrb[24].mxu1  ;;  %v4157_v46 = vpop.f32.mrb[18].mxu0 }
 0xd3f   :  { %v6249_v4 = vpop.f32.mrb[25].mxu1  ;;  %v6259_v32 = vpop.f32.mrb[19].mxu0  ;;  %v4541_v11 = vsel %vm1012_vm2, %v4005_v0, -inf  ;;  %v4547_v18 = vsel %vm1012_vm2, %v4157_v46, -inf }
 0xd40   :  { %4542 = vmax.xlane.f32.xlu0 %v4541_v11 }
 0xd42   :  { %v4309_v33 = vpop.f32.mrb[20].mxu0 }
 0xd43   :  { %v4081_v37 = vpop.f32.mrb[26].mxu1  ;;  %v6269_v39 = vpop.f32.mrb[21].mxu0  ;;  %v4553_v22 = vsel %vm1012_vm2, %v4309_v33, -inf }
 0xd44   :  { %v6254_v54 = vpop.f32.mrb[27].mxu1  ;;  %4548 = vmax.xlane.f32.xlu0 %v4547_v18  ;;  %v4544_v25 = vsel %vm1012_vm2, %v4081_v37, -inf }
 0xd45   :  { %4545 = vmax.xlane.f32.xlu1 %v4544_v25 }
 0xd46   :  { %v4461_v8 = vpop.f32.mrb[22].mxu0 }
 0xd47   :  { %v4233_v9 = vpop.f32.mrb[28].mxu1  ;;  %v6279_v35 = vpop.f32.mrb[23].mxu0  ;;  %v4559_v10 = vsel %vm1012_vm2, %v4461_v8, -inf }
 0xd48   :  { %v6264_v21 = vpop.f32.mrb[29].mxu1  ;;  %v4550_v51 = vsel %vm1012_vm2, %v4233_v9, -inf }
 0xd49   :  { %4554 = vmax.xlane.f32.xlu1 %v4553_v22  ;;  %4551 = vmax.xlane.f32.xlu0 %v4550_v51 }
 0xd4b   :  { %v7374_v17 = vpop.f32.mrb[30].mxu1 }
 0xd4c   :  { %v6274_v23 = vpop.f32.mrb[31].mxu1  ;;  %v4556_v20 = vsel %vm1012_vm2, %v7374_v17, -inf }
 0xd4d   :  { %4560 = vmax.xlane.f32.xlu1 %v4559_v10  ;;  %4557 = vmax.xlane.f32.xlu0 %v4556_v20 }
 0xd4f   :  { %v4537_v26 = vpop.f32.mrb[32].mxu1 }
 0xd50   :  { %v6284_v28 = vpop.f32.mrb[33].mxu1  ;;  %v4562_v38 = vsel %vm1012_vm2, %v4537_v26, -inf }
 0xd51   :  { %4563 = vmax.xlane.f32.xlu0 %v4562_v38 }
 0xd5e   :  { %3637 = vrot.lane.b32.xlu1 %v7157_v58, %s6574_s27 }
 0xd62   :  { %3645 = vrot.lane.b32.xlu1 %v7177_v12, %s6574_s27 }
 0xd66   :  { %3649 = vrot.lane.b32.xlu1 %v7191_v61, %s6574_s27 }
 0xd67   :  { %3641 = vrot.lane.b32.xlu0 %v7183_v6, %s6574_s27 }
 0xd6a   :  { %3639 = vrot.lane.b32.xlu1 %v7155_v56, %s6574_s27 }
 0xd6e   :  { %3643 = vrot.lane.b32.xlu1 %v7175_v59, %s6574_s27 }
 0xd72   :  { %3647 = vrot.lane.b32.xlu1 %v7185_v60, %s6574_s27 }
 0xdcd   :  { %v4543_v53 = vpop.xlane.xlu0 %4542 }
 0xdce   :  { %v4565_v58 = vsub.f32 %v4005_v0, %v4543_v53 }
 0xdd0   :  { %v4573_v40 = vmul.f32 1.442695, %v4565_v58 }
 0xdd1   :  { %v4549_v41 = vpop.xlane.xlu0 %4548 }
 0xdd2   :  { %6500 = vpow2.f32 %v4573_v40  ;;  %v4567_v12 = vsub.f32 %v4157_v46, %v4549_v41  ;;  %v4546_v24 = vpop.xlane.xlu1 %4545 }
 0xdd3   :  { %v4566_v61 = vsub.f32 %v4081_v37, %v4546_v24 }
 0xdd4   :  { %v4577_v42 = vmul.f32 1.442695, %v4567_v12 }
 0xdd5   :  { %v4575_v43 = vmul.f32 1.442695, %v4566_v61 }
 0xdd6   :  { %6502 = vpow2.f32 %v4577_v42  ;;  %v4555_v6 = vpop.xlane.xlu1 %4554  ;;  %v4552_v29 = vpop.xlane.xlu0 %4551 }
 0xdd7   :  { %6504 = vpow2.f32 %v4575_v43  ;;  %v4569_v56 = vsub.f32 %v4309_v33, %v4555_v6  ;;  %v4568_v30 = vsub.f32 %v4233_v9, %v4552_v29 }
 0xdd9   :  { %v4581_v59 = vmul.f32 1.442695, %v4569_v56  ;;  %v4579_v14 = vmul.f32 1.442695, %v4568_v30 }
 0xdda   :  { %v4561_v44 = vpop.xlane.xlu1 %4560  ;;  %v7394_v60 = vpop.xlane.xlu0 %4557 }
 0xddb   :  { %6506 = vpow2.f32 %v4581_v59  ;;  %v4571_v31 = vsub.f32 %v4461_v8, %v4561_v44 }
 0xddc   :  { %v7396_v34 = vpop.eup %6500  ;;  %6508 = vpow2.f32 %v4579_v14 }
 0xddd   :  { %v4585_v1 = vmul.f32 1.442695, %v4571_v31  ;;  %v4589_v13 = vsel %vm1012_vm2, %v7396_v34, 0.0 }
 0xdde   :  { %v3638_v3 = vpop.permute.xlu1 %3637  ;;  %v4564_v47 = vpop.xlane.xlu0 %4563  ;;  %4590 = vadd.xlane.f32.xlu1 %v4589_v13  ;;  %v4570_v13 = vsub.f32 %v7374_v17, %v7394_v60 }
 0xddf   :  { %v4572_v48 = vsub.f32 %v4537_v26, %v4564_v47  ;;  %6510 = vpow2.f32 %v4585_v1 }
 0xde0   :  { %v7400_v52 = vpop.eup %6502 }
 0xde1   :  { %v7402_v50 = vpop.eup %6504  ;;  %v4587_v2 = vmul.f32 1.442695, %v4572_v48  ;;  %v4595_v7 = vsel %vm1012_vm2, %v7400_v52, 0.0 }
 0xde2   :  { %v3646_v45 = vpop.permute.xlu1 %3645  ;;  %4596 = vadd.xlane.f32.xlu1 %v4595_v7  ;;  %v4592_v55 = vsel %vm1012_vm2, %v7402_v50, 0.0  ;;  %v3642_v63 = vpop.permute.xlu0 %3641 }
 0xde3   :  { %4593 = vadd.xlane.f32.xlu0 %v4592_v55  ;;  %6512 = vpow2.f32 %v4587_v2  ;;  %v3661_v62 = vcombine.low %v3638_v3, %v3646_v45  ;;  %v3662_v16 = vcombine.high %v3638_v3, %v3646_v45  ;;  %v4583_v3 = vmul.f32 1.442695, %v4570_v13 }
 0xde5   :  { %v7408_v57 = vpop.eup %6506  ;;  %v3669_v33 = vrot.slane %v3661_v62, %v6668_v27  ;;  %v3676_v37 = vrot.slane %v3662_v16, %v6668_v27  ;;  %6514 = vpow2.f32 %v4583_v3 }
 0xde6   :  { %v3650_v0 = vpop.permute.xlu1 %3649  ;;  %v4601_v46 = vsel %vm1012_vm2, %v7408_v57, 0.0  ;;  %v7412_v4 = vpop.eup %6508 }
 0xde7   :  { %v3677_v32 = vcombine.low %v3642_v63, %v3650_v0  ;;  %v3678_v11 = vcombine.high %v3642_v63, %v3650_v0  ;;  %4602 = vadd.xlane.f32.xlu0 %v4601_v46  ;;  %v4598_v54 = vsel %vm1012_vm2, %v7412_v4, 0.0 }
 0xde9   :  { %v3685_v39 = vrot.slane %v3677_v32, %v6668_v27  ;;  %v3692_v18 = vrot.slane %v3678_v11, %v6668_v27  ;;  %v7420_v25 = vpop.eup %6510 }
 0xdea   :  { %v4607_v20 = vsel %vm1012_vm2, %v7420_v25, 0.0  ;;  %v3640_v2 = vpop.permute.xlu1 %3639 }
 0xdeb   :  { %v3693_v8 = vcombine.low %v3669_v33, %v3685_v39  ;;  %v3694_v9 = vcombine.high %v3669_v33, %v3685_v39  ;;  %v3709_v35 = vcombine.low %v3676_v37, %v3692_v18  ;;  %v3710_v21 = vcombine.high %v3676_v37, %v3692_v18  ;;  %4599 = vadd.xlane.f32.xlu0 %v4598_v54 }
 0xded   :  { %v3701_v22 = vrot.slane %v3693_v8, %v6681_v36  ;;  %v3708_v51 = vrot.slane %v3694_v9, %v6681_v36  ;;  %v3717_v23 = vrot.slane %v3709_v35, %v6681_v36  ;;  %v3724_v10 = vrot.slane %v3710_v21, %v6681_v36  ;;  %v7428_v26 = vpop.eup %6512 }
 0xdee   :  { %v4610_v61 = vsel %vm1012_vm2, %v7428_v26, 0.0  ;;  %v3644_v7 = vpop.permute.xlu1 %3643 }
 0xdef   :  { %v3797_v28 = vcombine.low %v3701_v22, %v3708_v51  ;;  %v5937_v38 = vcombine.high %v3701_v22, %v3708_v51  ;;  %v3813_v53 = vcombine.low %v3717_v23, %v3724_v10  ;;  %v5938_v58 = vcombine.high %v3717_v23, %v3724_v10  ;;  %4608 = vadd.xlane.f32.xlu0 %v4607_v20  ;;  %v7453_v47 = vpop.eup %6514 }
 0xdf0   :  { %v4604_v48 = vsel %vm1012_vm2, %v7453_v47, 0.0 }
 0xdf1   :  { %v3804_v40 = vrot.slane %v3797_v28, %v6668_v27  ;;  %v3812_v41 = vrot.slane %v5937_v38, %v6668_v27  ;;  %v3820_v12 = vrot.slane %v3813_v53, %v6668_v27  ;;  %v3828_v24 = vrot.slane %v5938_v58, %v6668_v27 }
 0xdf2   :  { %v3648_v45 = vpop.permute.xlu1 %3647 }
 0xdf3   :  { %4611 = vadd.xlane.f32.xlu0 %v4610_v61  ;;  %3651 = vrot.lane.b32.xlu1 %v7195_v15, %s6574_s27  ;;  %v3829_v42 = vcombine.low %v3804_v40, %v3812_v41  ;;  %v3845_v43 = vcombine.low %v3820_v12, %v3828_v24  ;;  %v3830_v6 = vcombine.high %v3804_v40, %v3812_v41 }
 0xdf4   :  { %v3846_v29 = vcombine.high %v3820_v12, %v3828_v24  ;;  %v3729_v63 = vcombine.low %v3640_v2, %v3648_v45  ;;  %v3730_v0 = vcombine.high %v3640_v2, %v3648_v45 }
 0xdf5   :  { %v3837_v56 = vrot.slane %v3829_v42, %v6681_v36  ;;  %v3853_v30 = vrot.slane %v3845_v43, %v6681_v36  ;;  %v7441_v59 = vrot.slane %v3830_v6, %v6681_v36 }
 0xdf6   :  { %v7444_v14 = vrot.slane %v3846_v29, %v6681_v36  ;;  %v3737_v33 = vrot.slane %v3729_v63, %v6668_v27  ;;  %v3744_v37 = vrot.slane %v3730_v0, %v6668_v27 }
 0xdf7   :  { %v3861_v44 = vcombine.low %v3837_v56, %v3853_v30  ;;  %v3862_v31 = vcombine.high %v3837_v56, %v3853_v30 }
 0xdf8   :  { %v3863_v1 = vcombine.low %v7441_v59, %v7444_v14  ;;  %v3864_v15 = vcombine.high %v7441_v59, %v7444_v14 }
 0xdf9   :  { %6286 = vmatpush3.msra.mxu0 %v3861_v44 }
 0xdfa   :  { %6295 = vmatprep.subr.mxu0 %v6570_v19 }
 0xe17   :  { %4605 = vadd.xlane.f32.xlu1 %v4604_v48 }
 0xe6b   :  { %v4591_v55 = vpop.xlane.xlu1 %4590 }
 0xe6c   :  { %6516 = vrcp.f32 %v4591_v55 }
 0xe6f   :  { %v4597_v62 = vpop.xlane.xlu1 %4596 }
 0xe70   :  { %6518 = vrcp.f32 %v4597_v62  ;;  %v4594_v16 = vpop.xlane.xlu0 %4593 }
 0xe73   :  { %v3652_v46 = vpop.permute.xlu1 %3651 }
 0xe74   :  { %v3745_v17 = vcombine.low %v3644_v7, %v3652_v46  ;;  %v3746_v60 = vcombine.high %v3644_v7, %v3652_v46  ;;  %v4603_v32 = vpop.xlane.xlu0 %4602 }
 0xe75   :  { %6520 = vrcp.f32 %v4603_v32 }
 0xe76   :  { %v6517_v11 = vpop.eup %6516  ;;  %v3753_v39 = vrot.slane %v3745_v17, %v6668_v27  ;;  %v3760_v18 = vrot.slane %v3746_v60, %v6668_v27  ;;  %6522 = vrcp.f32 %v4594_v16 }
 0xe77   :  { %v4614_v54 = vmul.f32 %v6517_v11, %v7396_v34 }
 0xe78   :  { %v3761_v8 = vcombine.low %v3737_v33, %v3753_v39  ;;  %v3762_v9 = vcombine.high %v3737_v33, %v3753_v39  ;;  %v3777_v35 = vcombine.low %v3744_v37, %v3760_v18  ;;  %v3778_v21 = vcombine.high %v3744_v37, %v3760_v18  ;;  %v4600_v22 = vpop.xlane.xlu0 %4599 }
 0xe79   :  { %6288 = vmatmul.mubr.msk.f32.vlgmr.msra.gmra.mrb[24].mxu0 %vm1012_vm2, %v4614_v54  ;;  %6524 = vrcp.f32 %v4600_v22 }
 0xe7a   :  { %v6519_v51 = vpop.eup %6518  ;;  %v3769_v23 = vrot.slane %v3761_v8, %v6681_v36  ;;  %v3776_v10 = vrot.slane %v3762_v9, %v6681_v36  ;;  %v3785_v20 = vrot.slane %v3777_v35, %v6681_v36  ;;  %v3792_v28 = vrot.slane %v3778_v21, %v6681_v36  ;;  %6296 = vmatpush3.msra.mxu0 %v3862_v31 }
 0xe7b   :  { %v4618_v34 = vmul.f32 %v6519_v51, %v7400_v52  ;;  %6297 = vmatprep.mubr.msk.f32.mxu0 %vm6571_vm1, %v6570_v19  ;;  %6305 = vmatprep.subr.mxu0 %v6570_v19 }
 0xe7c   :  { %v3865_v38 = vcombine.low %v3769_v23, %v3776_v10  ;;  %v5939_v53 = vcombine.high %v3769_v23, %v3776_v10  ;;  %v3881_v58 = vcombine.low %v3785_v20, %v3792_v28  ;;  %v4609_v40 = vpop.xlane.xlu0 %4608  ;;  %v5940_v41 = vcombine.high %v3785_v20, %v3792_v28 }
 0xe7d   :  { %6526 = vrcp.f32 %v4609_v40  ;;  %6298 = vmatmul.mubr.msk.f32.vlgmr.msra.gmra.mrb[26].mxu0 %vm1012_vm2, %v4618_v34 }
 0xe7e   :  { %v3872_v12 = vrot.slane %v3865_v38, %v6668_v27  ;;  %v3880_v24 = vrot.slane %v5939_v53, %v6668_v27  ;;  %v3888_v52 = vrot.slane %v3881_v58, %v6668_v27  ;;  %6306 = vmatpush3.msra.mxu0 %v3863_v1  ;;  %6307 = vmatprep.mubr.msk.f32.mxu0 %vm6571_vm1, %v6570_v19 }
 0xe7f   :  { %v6521_v61 = vpop.eup %6520  ;;  %v3896_v42 = vrot.slane %v5940_v41, %v6668_v27  ;;  %6315 = vmatprep.subr.mxu0 %v6570_v19 }
 0xe80   :  { %v4622_v43 = vmul.f32 %v6521_v61, %v7408_v57  ;;  %v3897_v6 = vcombine.low %v3872_v12, %v3880_v24  ;;  %v6523_v30 = vpop.eup %6522  ;;  %v3898_v31 = vcombine.high %v3872_v12, %v3880_v24  ;;  %v2941_v61 = vld [vmem:[%s7662_s1 + $0xd0] sm:$0xff] }
 0xe81   :  { %v3913_v29 = vcombine.low %v3888_v52, %v3896_v42  ;;  %v3914_v1 = vcombine.high %v3888_v52, %v3896_v42  ;;  %v4616_v3 = vmul.f32 %v6523_v30, %v7402_v50  ;;  %v2940_v52 = vld [vmem:[%s7662_s1 + $0xc8] sm:$0xff] }
 0xe82   :  { %6308 = vmatmul.mubr.msk.f32.vlgmr.msra.gmra.mrb[28].mxu0 %vm1012_vm2, %v4622_v43  ;;  %v3905_v56 = vrot.slane %v3897_v6, %v6681_v36  ;;  %v3912_v7 = vrot.slane %v3898_v31, %v6681_v36 }
 0xe83   :  { %6316 = vmatpush3.msra.mxu0 %v3864_v15  ;;  %v3921_v44 = vrot.slane %v3913_v29, %v6681_v36  ;;  %6317 = vmatprep.mubr.msk.f32.mxu0 %vm6571_vm1, %v6570_v19  ;;  %v6525_v57 = vpop.eup %6524  ;;  %v3928_v45 = vrot.slane %v3914_v1, %v6681_v36 }
 0xe84   :  { %v4620_v14 = vmul.f32 %v6525_v57, %v7412_v4 }
 0xe85   :  { %v3929_v13 = vcombine.low %v3905_v56, %v3921_v44  ;;  %v3930_v2 = vcombine.high %v3905_v56, %v3921_v44  ;;  %v3931_v50 = vcombine.low %v3912_v7, %v3928_v45  ;;  %v3932_v16 = vcombine.high %v3912_v7, %v3928_v45 }
 0xe86   :  { %v6414_v56 = vpack.c.bf16 %v2941_v61, %v2940_v52 }
 0xe87   :  { %v6527_v48 = vpop.eup %6526  ;;  %6291 = vmatpush3.msra.mxu1 %v3929_v13 }
 0xe88   :  { %v4626_v59 = vmul.f32 %v6527_v48, %v7420_v25  ;;  %6293 = vmatmul.mubr.msk.f32.vlgmr.msra.gmra.mrb[34].mxu1 %vm1012_vm2, %v4616_v3  ;;  %6300 = vmatprep.subr.mxu1 %v6570_v19  ;;  %v4612_v25 = vpop.xlane.xlu0 %4611 }
 0xe89   :  { %6301 = vmatpush3.msra.mxu1 %v3930_v2  ;;  %6302 = vmatprep.mubr.msk.f32.mxu1 %vm6571_vm1, %v6570_v19 }
 0xe8a   :  { %6318 = vmatmul.mubr.msk.f32.vlgmr.msra.gmra.mrb[30].mxu0 %vm1012_vm2, %v4626_v59  ;;  %6310 = vmatprep.subr.mxu1 %v6570_v19 }
 0xe8b   :  { %6415 = vmatprep.subr.bf16.mxu0 %v6414_v56 }
 0xe8c   :  { %6303 = vmatmul.mubr.msk.f32.vlgmr.msra.gmra.mrb[36].mxu1 %vm1012_vm2, %v4620_v14  ;;  %6417 = vmatpush3.bf16.msra.mxu0 %v6414_v56 }
 0xe8d   :  { %6311 = vmatpush3.msra.mxu1 %v3931_v50  ;;  %6312 = vmatprep.mubr.msk.f32.mxu1 %vm6571_vm1, %v6570_v19 }
 0xe8e   :  { %6320 = vmatprep.subr.mxu1 %v6570_v19 }
 0xea4   :  { %v4606_v15 = vpop.xlane.xlu1 %4605 }
 0xea5   :  { %6528 = vrcp.f32 %v4606_v15 }
 0xea6   :  { %6530 = vrcp.f32 %v4612_v25 }
 0xeaf   :  { %v6529_v55 = vpop.eup %6528 }
 0xeb0   :  { %v4624_v4 = vmul.f32 %v6529_v55, %v7453_v47  ;;  %v6531_v62 = vpop.eup %6530 }
 0xeb1   :  { %v4628_v63 = vmul.f32 %v6531_v62, %v7428_v26 }
 0xeb2   :  { %6313 = vmatmul.mubr.msk.f32.vlgmr.msra.gmra.mrb[38].mxu1 %vm1012_vm2, %v4624_v4 }
 0xeb3   :  { %6321 = vmatpush3.msra.mxu1 %v3932_v16  ;;  %6322 = vmatprep.mubr.msk.f32.mxu1 %vm6571_vm1, %v6570_v19 }
 0xeb6   :  { %6323 = vmatmul.mubr.msk.f32.vlgmr.msra.gmra.mrb[40].mxu1 %vm1012_vm2, %v4628_v63 }
 0xf4c   :  { %v4698_v0 = vpop.f32.mrb[24].mxu0 }
 0xf4d   :  { %v6289_v46 = vpop.f32.mrb[25].mxu0 }
 0xf50   :  { %v4844_v17 = vpop.f32.mrb[26].mxu0 }
 0xf51   :  { %v6299_v60 = vpop.f32.mrb[27].mxu0 }
 0xf55   :  { %v4990_v32 = vpop.f32.mrb[28].mxu0 }
 0xf56   :  { %v5213_v11 = vcombine.low %v4698_v0, %v4990_v32  ;;  %v5214_v33 = vcombine.high %v4698_v0, %v4990_v32  ;;  %v6309_v47 = vpop.f32.mrb[29].mxu0 }
 0xf57   :  { %v2942_v47 = vld [vmem:[%s7662_s1 + $0xd8] sm:$0xff] }
 0xf58   :  { %v5221_v19 = vrot.slane %v5213_v11, %v6668_v27  ;;  %v5228_v26 = vrot.slane %v5214_v33, %v6668_v27 }
 0xf5b   :  { %v4771_v37 = vpop.f32.mrb[34].mxu1 }
 0xf5c   :  { %v6294_v39 = vpop.f32.mrb[35].mxu1 }
 0xf5d   :  { %v5136_v18 = vpop.f32.mrb[30].mxu0 }
 0xf5e   :  { %v5229_v54 = vcombine.low %v4844_v17, %v5136_v18  ;;  %v5230_v8 = vcombine.high %v4844_v17, %v5136_v18  ;;  %v6319_v9 = vpop.f32.mrb[31].mxu0 }
 0xf5f   :  { %v4917_v35 = vpop.f32.mrb[36].mxu1 }
 0xf60   :  { %v5237_v21 = vrot.slane %v5229_v54, %v6668_v27  ;;  %v5244_v22 = vrot.slane %v5230_v8, %v6668_v27  ;;  %v6304_v51 = vpop.f32.mrb[37].mxu1 }
 0xf62   :  { %v5245_v23 = vcombine.low %v5221_v19, %v5237_v21  ;;  %v5246_v10 = vcombine.high %v5221_v19, %v5237_v21  ;;  %v5261_v20 = vcombine.low %v5228_v26, %v5244_v22  ;;  %v5262_v28 = vcombine.high %v5228_v26, %v5244_v22 }
 0xf64   :  { %v5253_v34 = vrot.slane %v5245_v23, %v6681_v36  ;;  %v5260_v38 = vrot.slane %v5246_v10, %v6681_v36  ;;  %v5269_v53 = vrot.slane %v5261_v20, %v6681_v36  ;;  %v5276_v58 = vrot.slane %v5262_v28, %v6681_v36 }
 0xf66   :  { %v5349_v40 = vcombine.low %v5253_v34, %v5260_v38  ;;  %v5965_v41 = vcombine.high %v5253_v34, %v5260_v38  ;;  %v5365_v12 = vcombine.low %v5269_v53, %v5276_v58  ;;  %v5966_v24 = vcombine.high %v5269_v53, %v5276_v58 }
 0xf68   :  { %v5356_v42 = vrot.slane %v5349_v40, %v6668_v27  ;;  %v5364_v43 = vrot.slane %v5965_v41, %v6668_v27  ;;  %v5372_v6 = vrot.slane %v5365_v12, %v6668_v27  ;;  %v5380_v29 = vrot.slane %v5966_v24, %v6668_v27 }
 0xf6a   :  { %v5381_v30 = vcombine.low %v5356_v42, %v5364_v43  ;;  %v5397_v44 = vcombine.low %v5372_v6, %v5380_v29  ;;  %v5382_v31 = vcombine.high %v5356_v42, %v5364_v43  ;;  %v5398_v1 = vcombine.high %v5372_v6, %v5380_v29 }
 0xf6c   :  { %v7528_v13 = vrot.slane %v5381_v30, %v6681_v36  ;;  %v7531_v57 = vrot.slane %v5397_v44, %v6681_v36  ;;  %v5396_v3 = vrot.slane %v5382_v31, %v6681_v36  ;;  %v5412_v48 = vrot.slane %v5398_v1, %v6681_v36 }
 0xf6e   :  { %v5414_v2 = vcombine.high %v7528_v13, %v7531_v57  ;;  %v5415_v7 = vcombine.low %v5396_v3, %v5412_v48  ;;  %v5416_v45 = vcombine.high %v5396_v3, %v5412_v48  ;;  %v5413_v59 = vcombine.low %v7528_v13, %v7531_v57  ;;  %v5969_v57 = vld [vmem:[%s7662_s1 + $0x149] ss:$0 sm:$0xff] }
 0xf70   :  { %5487 = vrot.lane.b32.xlu0 %v5414_v2, %s6575_s4 }
 0xf74   :  { %5495 = vrot.lane.b32.xlu0 %v5415_v7, %s6576_s5 }
 0xf85   :  { %v5063_v14 = vpop.f32.mrb[38].mxu1 }
 0xf86   :  { %v5281_v50 = vcombine.low %v4771_v37, %v5063_v14  ;;  %v5282_v25 = vcombine.high %v4771_v37, %v5063_v14  ;;  %v6314_v15 = vpop.f32.mrb[39].mxu1  ;;  %v2943_v37 = vld [vmem:[%s7662_s1 + $0xe0] sm:$0xff] }
 0xf87   :  { %v6418_v9 = vpack.c.bf16 %v2943_v37, %v2942_v47  ;;  %v2948_v47 = vld [vmem:[%s7662_s1 + $0x108] sm:$0xff]  ;;  %v2949_v37 = vld [vmem:[%s7662_s1 + $0x110] sm:$0xff] }
 0xf88   :  { %v5289_v63 = vrot.slane %v5281_v50, %v6668_v27  ;;  %v5296_v0 = vrot.slane %v5282_v25, %v6668_v27 }
 0xf89   :  { %v5209_v55 = vpop.f32.mrb[40].mxu1  ;;  %6419 = vmatprep.subr.bf16.mxu0 %v6418_v9 }
 0xf8a   :  { %v5297_v4 = vcombine.low %v4917_v35, %v5209_v55  ;;  %v5298_v62 = vcombine.high %v4917_v35, %v5209_v55  ;;  %v6324_v16 = vpop.f32.mrb[41].mxu1  ;;  %6421 = vmatpush3.bf16.msra.mxu0 %v6418_v9  ;;  %v2952_v9 = vld [vmem:[%s7662_s1 + $0x128] sm:$0xff] }
 0xf8c   :  { %v5305_v46 = vrot.slane %v5297_v4, %v6668_v27  ;;  %v5312_v17 = vrot.slane %v5298_v62, %v6668_v27 }
 0xf8e   :  { %v5313_v60 = vcombine.low %v5289_v63, %v5305_v46  ;;  %v5314_v32 = vcombine.high %v5289_v63, %v5305_v46  ;;  %v5329_v11 = vcombine.low %v5296_v0, %v5312_v17  ;;  %v5330_v33 = vcombine.high %v5296_v0, %v5312_v17  ;;  %v2945_v17 = vld [vmem:[%s7662_s1 + $0xf0] sm:$0xff] }
 0xf90   :  { %v5321_v39 = vrot.slane %v5313_v60, %v6681_v36  ;;  %v5328_v18 = vrot.slane %v5314_v32, %v6681_v36  ;;  %v5337_v54 = vrot.slane %v5329_v11, %v6681_v36  ;;  %v5344_v8 = vrot.slane %v5330_v33, %v6681_v36  ;;  %v2946_v32 = vld [vmem:[%s7662_s1 + $0xf8] sm:$0xff]  ;;  %v2947_v11 = vld [vmem:[%s7662_s1 + $0x100] sm:$0xff] }
 0xf91   :  { %v6426_v33 = vpack.c.bf16 %v2947_v11, %v2946_v32  ;;  %v5980_v32 = vld [vmem:[%s7662_s1 + $0x14c] ss:$0 sm:$0xff] }
 0xf92   :  { %v5417_v35 = vcombine.low %v5321_v39, %v5328_v18  ;;  %v5967_v19 = vcombine.high %v5321_v39, %v5328_v18  ;;  %v5433_v26 = vcombine.low %v5337_v54, %v5344_v8  ;;  %v5968_v21 = vcombine.high %v5337_v54, %v5344_v8  ;;  %v2950_v39 = vld [vmem:[%s7662_s1 + $0x118] sm:$0xff]  ;;  %v2951_v54 = vld [vmem:[%s7662_s1 + $0x120] sm:$0xff] }
 0xf93   :  { %v6430_v18 = vpack.c.bf16 %v2949_v37, %v2948_v47  ;;  %v6434_v8 = vpack.c.bf16 %v2951_v54, %v2950_v39  ;;  %v5981_v37 = vld [vmem:[%s7662_s1 + $0x14d] ss:$0 sm:$0xff] }
 0xf94   :  { %v5424_v22 = vrot.slane %v5417_v35, %v6668_v27  ;;  %v5432_v51 = vrot.slane %v5967_v19, %v6668_v27  ;;  %v5440_v23 = vrot.slane %v5433_v26, %v6668_v27  ;;  %v5448_v10 = vrot.slane %v5968_v21, %v6668_v27  ;;  %v2953_v35 = vld [vmem:[%s7662_s1 + $0x130] sm:$0xff] }
 0xf95   :  { %6431 = vmatprep.subr.bf16.mxu0 %v6430_v18  ;;  %v6438_v19 = vpack.c.bf16 %v2953_v35, %v2952_v9 }
 0xf96   :  { %v5450_v20 = vcombine.high %v5424_v22, %v5432_v51  ;;  %v5466_v28 = vcombine.high %v5440_v23, %v5448_v10  ;;  %v5449_v34 = vcombine.low %v5424_v22, %v5432_v51  ;;  %v5465_v38 = vcombine.low %v5440_v23, %v5448_v10 }
 0xf98   :  { %v5464_v53 = vrot.slane %v5450_v20, %v6681_v36  ;;  %v5480_v58 = vrot.slane %v5466_v28, %v6681_v36  ;;  %v5457_v40 = vrot.slane %v5449_v34, %v6681_v36  ;;  %v5473_v41 = vrot.slane %v5465_v38, %v6681_v36  ;;  %v5972_v28 = vld [vmem:[%s7662_s1 + $0x14a] ss:$0 sm:$0xff]  ;;  %v5973_v38 = vld [vmem:[%s7662_s1 + $0x14b] ss:$0 sm:$0xff] }
 0xf9a   :  { %v5483_v12 = vcombine.low %v5464_v53, %v5480_v58  ;;  %v5482_v24 = vcombine.high %v5457_v40, %v5473_v41  ;;  %v5484_v52 = vcombine.high %v5464_v53, %v5480_v58  ;;  %v5481_v61 = vcombine.low %v5457_v40, %v5473_v41 }
 0xf9c   :  { %5497 = vrot.lane.b32.xlu0 %v5483_v12, %s6576_s5  ;;  %5489 = vrot.lane.b32.xlu1 %v5482_v24, %s6575_s4 }
 0xfa0   :  { %5503 = vrot.lane.b32.xlu0 %v5416_v45, %s6577_s10  ;;  %5505 = vrot.lane.b32.xlu1 %v5484_v52, %s6577_s10  ;;  %v2954_v52 = vld [vmem:[%s7662_s1 + $0x138] sm:$0xff] }
 0xfe2   :  { %v5488_v27 = vpop.permute.xlu0 %5487 }
 0xfe3   :  { %v5509_v36 = vsel %vm1012_vm2, %v5413_v59, %v5488_v27 }
 0xfe6   :  { %v5496_v42 = vpop.permute.xlu0 %5495 }
 0xfe7   :  { %v5511_v56 = vsel %vm2591_vm3, %v5509_v36, %v5496_v42  ;;  %v5974_v42 = vld [vmem:[%s7662_s1 + $0x14e] ss:$0 sm:$0xff] }
0x100e   :  { %v5498_v43 = vpop.permute.xlu0 %5497  ;;  %v5490_v6 = vpop.permute.xlu1 %5489 }
0x100f   :  { %v5510_v29 = vsel %vm1012_vm2, %v5481_v61, %v5490_v6  ;;  %v2955_v61 = vld [vmem:[%s7662_s1 + $0x140] sm:$0xff] }
0x1010   :  { %v5512_v31 = vsel %vm2591_vm3, %v5510_v29, %v5498_v43  ;;  %v6442_v27 = vpack.c.bf16 %v2955_v61, %v2954_v52 }
0x1012   :  { %v5504_v30 = vpop.permute.xlu0 %5503  ;;  %v5506_v44 = vpop.permute.xlu1 %5505 }
0x1013   :  { %v5513_v1 = vsel %vm2594_vm4, %v5511_v56, %v5504_v30  ;;  %v5514_v13 = vsel %vm2594_vm4, %v5512_v31, %v5506_v44  ;;  %v5977_v44 = vld [vmem:[%s7662_s1 + $0x14f] ss:$0 sm:$0xff] }
0x1014   :  { %6333 = vmatprep.mubr.msk.f32.mxu0 %vm46_vm0, %v5513_v1 }
0x1015   :  { %6334 = vmatmul.mubr.msk.f32.vlgmr.msra.gmra.mrb[32].mxu0 %vm46_vm0, %v5514_v13 }
0x1016   :  { %6433 = vmatpush3.bf16.msra.mxu0 %v6430_v18 }
0x1017   :  { %6435 = vmatprep.subr.bf16.mxu0 %v6434_v8 }
0x101a   :  { %6437 = vmatpush3.bf16.msra.mxu0 %v6434_v8 }
0x101b   :  { %6439 = vmatprep.subr.bf16.mxu0 %v6438_v19 }
0x101e   :  { %6441 = vmatpush3.bf16.msra.mxu0 %v6438_v19 }
0x101f   :  { %6443 = vmatprep.subr.bf16.mxu0 %v6442_v27 }
0x1022   :  { %6445 = vmatpush3.bf16.msra.mxu0 %v6442_v27 }
0x10e8   :  { %v6335_v3 = vpop.f32.mrb[32].mxu0 }
0x10e9   :  { %v5597_v48 = vadd.f32 %v6335_v3, %v5969_v57  ;;  %v5591_v2 = vpop.f32.mrb[33].mxu0 }
0x10ea   :  { %v5592_v7 = vadd.f32 %v5969_v57, %v5591_v2 }
0x10eb   :  { %v5601_v45 = vadd.f32 %v5597_v48, %v7144_v5 }
0x10ec   :  { %v5600_v59 = vadd.f32 %v5592_v7, %v7142_v49  ;;  %v2944_v49 = vld [vmem:[%s7662_s1 + $0xe8] sm:$0xff] }
0x10ed   :  { %v5605_v14 = vsel %vm46_vm0, %v5601_v45, 0.0  ;;  %v6422_v60 = vpack.c.bf16 %v2945_v17, %v2944_v49 }
0x10ee   :  { %5606 = vadd.xlane.f32.xlu1 %v5605_v14  ;;  %v5602_v50 = vsel %vm46_vm0, %v5600_v59, 0.0 }
0x10ef   :  { %5603 = vadd.xlane.f32.xlu0 %v5602_v50  ;;  %6423 = vmatprep.subr.bf16.mxu1 %v6422_v60 }
0x10f0   :  { %6425 = vmatpush3.bf16.msra.mxu1 %v6422_v60 }
0x10f1   :  { %6427 = vmatprep.subr.bf16.mxu1 %v6426_v33 }
0x10f4   :  { %6429 = vmatpush3.bf16.msra.mxu1 %v6426_v33 }
0x117b   :  { %v5607_v25 = vpop.xlane.xlu1 %5606 }
0x117c   :  { %v5609_v15 = vmul.f32 0.03125, %v5607_v25  ;;  %v5604_v55 = vpop.xlane.xlu0 %5603 }
0x117d   :  { %v5608_v4 = vmul.f32 0.03125, %v5604_v55 }
0x117e   :  { %v5611_v62 = vsub.f32 %v5601_v45, %v5609_v15 }
0x117f   :  { %v5610_v16 = vsub.f32 %v5600_v59, %v5608_v4 }
0x1180   :  { %v5613_v46 = vmul.f32 %v5611_v62, %v5611_v62 }
0x1181   :  { %v5612_v63 = vmul.f32 %v5610_v16, %v5610_v16 }
0x1182   :  { %v5617_v5 = vsel %vm46_vm0, %v5613_v46, 0.0 }
0x1183   :  { %v5614_v0 = vsel %vm46_vm0, %v5612_v63, 0.0 }
0x1184   :  { %5615 = vadd.xlane.f32.xlu0 %v5614_v0 }
0x1188   :  { %5618 = vadd.xlane.f32.xlu0 %v5617_v5 }
0x1211   :  { %v5616_v26 = vpop.xlane.xlu0 %5615 }
0x1212   :  { %v5620_v21 = vmul.f32 0.03125, %v5616_v26 }
0x1214   :  { %v5622_v22 = vadd.f32 1e-05, %v5620_v21 }
0x1215   :  { %v5619_v51 = vpop.xlane.xlu0 %5618 }
0x1216   :  { %6532 = vrsqrt.f32 %v5622_v22  ;;  %v5621_v23 = vmul.f32 0.03125, %v5619_v51 }
0x1218   :  { %v5623_v10 = vadd.f32 1e-05, %v5621_v23 }
0x121a   :  { %6534 = vrsqrt.f32 %v5623_v10 }
0x1220   :  { %v6533_v20 = vpop.eup %6532 }
0x1221   :  { %v5626_v34 = vmul.f32 %v6533_v20, %v5610_v16 }
0x1223   :  { %v5632_v53 = vmul.f32 %v5972_v28, %v5626_v34 }
0x1224   :  { %v6535_v58 = vpop.eup %6534 }
0x1225   :  { %v5627_v40 = vmul.f32 %v6535_v58, %v5611_v62  ;;  %v5638_v41 = vadd.f32 %v5973_v38, %v5632_v53 }
0x1227   :  { %v5633_v12 = vmul.f32 %v5972_v28, %v5627_v40  ;;  %6344 = vmatprep.mubr.msk.f32.mxu1 %vm46_vm0, %v5638_v41 }
0x1229   :  { %v5639_v24 = vadd.f32 %v5973_v38, %v5633_v12 }
0x122b   :  { %6345 = vmatmul.mubr.msk.f32.vlgmr.msra.gmra.mrb[42].mxu1 %vm46_vm0, %v5639_v24 }
0x12fe   :  { %v6346_v43 = vpop.f32.mrb[42].mxu1 }
0x12ff   :  { %v5722_v6 = vadd.f32 %v6346_v43, %v5974_v42  ;;  %v5716_v29 = vpop.f32.mrb[43].mxu1 }
0x1300   :  { %v5717_v36 = vadd.f32 %v5974_v42, %v5716_v29 }
0x1301   :  { %v5726_v30 = vmax.f32 %v5722_v6, 0.0 }
0x1302   :  { %v5725_v56 = vmax.f32 %v5717_v36, 0.0 }
0x1304   :  { %6363 = vmatprep.mubr.msk.f32.mxu0 %vm2814_vm5, %v5725_v56 }
0x1305   :  { %6364 = vmatmul.mubr.msk.f32.vlgmr.msra.gmra.mrb[34].mxu0 %vm2814_vm5, %v5726_v30 }
0x13d8   :  { %v6365_v31 = vpop.f32.mrb[34].mxu0 }
0x13d9   :  { %v5809_v1 = vadd.f32 %v6365_v31, %v5977_v44  ;;  %v5803_v13 = vpop.f32.mrb[35].mxu0 }
0x13da   :  { %v5804_v57 = vadd.f32 %v5977_v44, %v5803_v13 }
0x13db   :  { %v5813_v3 = vadd.f32 %v5809_v1, %v5639_v24 }
0x13dc   :  { %v5812_v48 = vadd.f32 %v5804_v57, %v5638_v41 }
0x13dd   :  { %v5817_v2 = vsel %vm46_vm0, %v5813_v3, 0.0 }
0x13de   :  { %5818 = vadd.xlane.f32.xlu0 %v5817_v2  ;;  %v5814_v7 = vsel %vm46_vm0, %v5812_v48, 0.0 }
0x13df   :  { %5815 = vadd.xlane.f32.xlu1 %v5814_v7 }
0x146b   :  { %v5819_v45 = vpop.xlane.xlu0 %5818 }
0x146c   :  { %v5821_v59 = vmul.f32 0.03125, %v5819_v45  ;;  %v5816_v14 = vpop.xlane.xlu1 %5815 }
0x146d   :  { %v5820_v50 = vmul.f32 0.03125, %v5816_v14 }
0x146e   :  { %v5823_v25 = vsub.f32 %v5813_v3, %v5821_v59 }
0x146f   :  { %v5822_v15 = vsub.f32 %v5812_v48, %v5820_v50 }
0x1470   :  { %v5825_v55 = vmul.f32 %v5823_v25, %v5823_v25 }
0x1471   :  { %v5824_v4 = vmul.f32 %v5822_v15, %v5822_v15 }
0x1472   :  { %v5829_v62 = vsel %vm46_vm0, %v5825_v55, 0.0 }
0x1473   :  { %5830 = vadd.xlane.f32.xlu0 %v5829_v62  ;;  %v5826_v16 = vsel %vm46_vm0, %v5824_v4, 0.0 }
0x1474   :  { %5827 = vadd.xlane.f32.xlu1 %v5826_v16 }
0x1500   :  { %v5831_v63 = vpop.xlane.xlu0 %5830 }
0x1501   :  { %v5833_v0 = vmul.f32 0.03125, %v5831_v63  ;;  %v5828_v46 = vpop.xlane.xlu1 %5827 }
0x1502   :  { %v5832_v5 = vmul.f32 0.03125, %v5828_v46 }
0x1503   :  { %v5835_v49 = vadd.f32 1e-05, %v5833_v0 }
0x1504   :  { %v5834_v17 = vadd.f32 1e-05, %v5832_v5 }
0x1505   :  { %6536 = vrsqrt.f32 %v5835_v49 }
0x1506   :  { %6538 = vrsqrt.f32 %v5834_v17 }
0x150f   :  { %v6537_v60 = vpop.eup %6536 }
0x1510   :  { %v6539_v11 = vpop.eup %6538  ;;  %v5839_v33 = vmul.f32 %v6537_v60, %v5823_v25 }
0x1511   :  { %v5838_v47 = vmul.f32 %v6539_v11, %v5822_v15 }
0x1512   :  { %v5845_v39 = vmul.f32 %v5980_v32, %v5839_v33 }
0x1513   :  { %v5844_v18 = vmul.f32 %v5980_v32, %v5838_v47 }
0x1514   :  { %v5851_v54 = vadd.f32 %v5981_v37, %v5845_v39 }
0x1515   :  { %v5850_v8 = vadd.f32 %v5981_v37, %v5844_v18 }
0x1516   :  { %5853 = vst.msk [vmem:[#allocation2 + $0x8] sm:$0xff] %vm46_vm0, %v5851_v54 }
0x1517   :  { %5852 = vst.msk [vmem:[#allocation2] sm:$0xff] %vm46_vm0, %v5850_v8 }
0x1518   :  { %6553 = shalt.err (!%p6550_p4)
}
0x1519   :  { %s6554_s15 = scalar_lea.hbm %s7663_s2, 256 }
0x151a   :  { %p6555_p5 = scmp.ne.s32.totalorder %s7663_s2, %s6554_s15  ;;  %p6558_p6 = scmp.lt.u32.totalorder %s6554_s15, %s7663_s2 }
0x151c   :  { %p6560_p7 = pnand %p6558_p6, %p6555_p5 }
0x151e   :  { %6563 = shalt.err (!%p6560_p7)
}
0x151f   :  { %s6579_s19 = smov 128  }
0x1520   :  { %5865 = dma.vmem_to_hbm [thread:$0]  %s5860_s12, 256, %s7663_s2, [#allocation3], %s6579_s19, %s6579_s19, %s6575_s4  }
0x1521   :  { %6564 = dma.done.wait [#allocation3], 256  }
0x1522   :  { %6565 = vsyncadd [#allocation3], 4294967040 }
0x1523   :  { %5869 = vsyncpa [#allocation3], 1 }

</bundles_post_ra>
